<compile_context>
chip_gen: v6e
topology: v6e:2x2x1
jax: 0.10.0
libtpu: 0.0.40
codegen_flags: <defaults>
</compile_context>

<pallas_src>
import math

import jax
import jax.numpy as jnp
from jax.experimental import pallas as pl
from jax.experimental.pallas import tpu as pltpu

_PACK = 128           # edges packed per lane-dense row (128 * 3 classes = 384 lanes)
_TARGET_ROWS = 384    # ~49K edges per grid step (multiple of 8)


def _round_up(v, m):
    return ((v + m - 1) // m) * m


def _classifier_body(x_ref, w_ref, b_ref, g_ref, mask, o_ref, *, c_out):
    x = x_ref[...]                       # [rows, PACK*c_in]   (16/128-edge packed)
    w = w_ref[...]                       # [PACK*c_in, PACK*c_out] block-diag kron
    b = b_ref[...]                       # [1, PACK*c_out]

    # Linear for all packed edges at once; f32 accumulation on the MXU.
    h = jnp.dot(x, w, preferred_element_type=jnp.float32) + b   # [rows, L]
    h = jnp.maximum(h, 0.0)              # ReLU
    if mask is not None:                 # optional additive mask (same packed view)
        h = h + mask

    L = h.shape[-1]                      # PACK * c_out, multiple of 128
    g = g_ref[...]                       # [8, L] int32 group id of every lane
    g0 = g[0:1, :]

    # Shifts covering every +/-1..+/-(c_out-1) neighbour regardless of the
    # roll direction convention (positive shifts only).
    shifts = tuple(range(1, c_out)) + tuple(L - s for s in range(1, c_out))

    # Validity mask per shift: "the rolled-in lane belongs to the same edge".
    # Computed from the rolled group-id, so it is correct for any consistent
    # roll semantics (direction / wraparound).
    valid = []
    gmax = h
    for s in shifts:
        v = (pltpu.roll(g, shift=s, axis=1)[0:1, :] == g0)        # [1, L] bool
        hs = pltpu.roll(h, shift=s, axis=1)                       # [rows, L]
        valid.append(v)
        gmax = jnp.maximum(gmax, jnp.where(v, hs, -jnp.inf))

    # Numerically stable softmax within each group of c_out interleaved lanes.
    e = jnp.exp(h - gmax)
    gsum = e
    for s, v in zip(shifts, valid):
        es = pltpu.roll(e, shift=s, axis=1)
        gsum = gsum + jnp.where(v, es, 0.0)

    o_ref[...] = (e / gsum).astype(o_ref.dtype)


def _make_kernel(has_mask, c_out):
    if has_mask:
        def kernel(x_ref, w_ref, b_ref, g_ref, m_ref, o_ref):
            _classifier_body(x_ref, w_ref, b_ref, g_ref, m_ref[...], o_ref,
                             c_out=c_out)
    else:
        def kernel(x_ref, w_ref, b_ref, g_ref, o_ref):
            _classifier_body(x_ref, w_ref, b_ref, g_ref, None, o_ref,
                             c_out=c_out)
    return kernel


def linear_edge_classifier(x, weight, bias, mask=None, gumbel=False,
                           target_rows=_TARGET_ROWS):
    """JAX/Pallas equivalent of LinearEdgeClassifier.forward.

    x:      [N, C_in]  float32 edge features
    weight: [C_out, C_in] (PyTorch nn.Linear layout)
    bias:   [C_out]
    mask:   optional [N, C_out] additive mask
    Returns [N, C_out] softmax probabilities.
    """
    if gumbel:
        # TODO(synk): gumbel_softmax(hard=True) straight-through sampling not
        # implemented; only the softmax path is provided.
        raise NotImplementedError("gumbel path not implemented in Pallas kernel")

    n, c_in = x.shape
    c_out = weight.shape[0]

    x = x.astype(jnp.float32)
    if mask is not None:
        mask = mask.astype(jnp.float32)

    # Pad only to a multiple of the 128-edge packing (zero-copy when aligned).
    n_pad = _round_up(max(n, 1), _PACK)
    if n_pad != n:
        x = jnp.pad(x, ((0, n_pad - n), (0, 0)))
        if mask is not None:
            mask = jnp.pad(mask, ((0, n_pad - n), (0, 0)))

    rows = n_pad // _PACK
    in_w = _PACK * c_in                  # 1024 for c_in=8
    out_w = _PACK * c_out                # 384  for c_out=3

    # Free, contiguous lane-dense views (no data movement).
    x_p = x.reshape(rows, in_w)

    # Small precomputed constants (one-time, tiny vs the edge stream).
    w_big = jnp.kron(jnp.eye(_PACK, dtype=jnp.float32),
                     weight.astype(jnp.float32).T)            # [in_w, out_w]
    b_big = jnp.tile(bias.astype(jnp.float32), _PACK).reshape(1, out_w)
    gid = jnp.tile((jnp.arange(out_w, dtype=jnp.int32) // c_out)[None, :],
                   (8, 1))                                     # [8, out_w]

    # Tile over packed rows: big tiles (~49K edges) but keep >= ~8 grid steps
    # when possible so v7x's two TensorCores both get work.
    if rows <= 8:
        tile_rows = rows
    else:
        tile_rows = min(target_rows, _round_up(pl.cdiv(rows, 8), 8))
    grid = (pl.cdiv(rows, tile_rows),)

    in_specs = [
        pl.BlockSpec((tile_rows, in_w), lambda i: (i, 0)),     # x, streamed
        pl.BlockSpec((in_w, out_w), lambda i: (0, 0)),         # packed W, resident
        pl.BlockSpec((1, out_w), lambda i: (0, 0)),            # packed bias
        pl.BlockSpec((8, out_w), lambda i: (0, 0)),            # lane group ids
    ]
    args = [x_p, w_big, b_big, gid]

    has_mask = mask is not None
    if has_mask:
        m_p = mask.reshape(rows, out_w)
        in_specs.append(pl.BlockSpec((tile_rows, out_w), lambda i: (i, 0)))
        args.append(m_p)

    bytes_accessed = 4 * (rows * in_w + rows * out_w + w_big.size + b_big.size
                          + gid.size + (rows * out_w if has_mask else 0))
    cost = pl.CostEstimate(
        flops=2 * rows * in_w * out_w,
        transcendentals=n_pad * c_out,
        bytes_accessed=bytes_accessed,
    )

    out_p = pl.pallas_call(
        _make_kernel(has_mask, c_out),
        out_shape=jax.ShapeDtypeStruct((rows, out_w), jnp.float32),
        grid=grid,
        in_specs=in_specs,
        out_specs=pl.BlockSpec((tile_rows, out_w), lambda i: (i, 0)),
        compiler_params=pltpu.CompilerParams(
            dimension_semantics=("parallel",),     # shard row-tiles across TCs
            vmem_limit_bytes=32 * 1024 * 1024,     # v5e default (16 MiB) is tight
        ),
        cost_estimate=cost,
    )(*args)

    out = out_p.reshape(n_pad, c_out)    # free view back to [N_pad, C_out]
    if n_pad != n:
        out = out[:n]
    return out


def init_linear_params(key, in_channels, out_channels):
    """Deterministic init mirroring torch.nn.Linear's default (uniform +-1/sqrt(fan_in))."""
    k_w, k_b = jax.random.split(key)
    bound = 1.0 / math.sqrt(in_channels)
    weight = jax.random.uniform(
        k_w, (out_channels, in_channels), jnp.float32, -bound, bound)
    bias = jax.random.uniform(
        k_b, (out_channels,), jnp.float32, -bound, bound)
    return weight, bias


if __name__ == "__main__":
    key = jax.random.PRNGKey(0)
    k_p, k1, k2, k3, k4, k5 = jax.random.split(key, 6)

    # Edge features phi(u,v) = [t, z_pocket, z_ligand, z_u, l_u, z_v, l_v, z_g]
    in_channels = 8
    out_channels = 3   # "we reduce the vector into 3 numbers"

    # Quantize test data to bf16-representable f32 so the comparison is
    # independent of matmul precision policy (products are then exact in f32).
    def q(a):
        return a.astype(jnp.bfloat16).astype(jnp.float32)

    weight, bias = init_linear_params(k_p, in_channels, out_channels)
    weight, bias = q(weight), q(bias)

    def ref(x, m=None):
        h = jax.nn.relu(x @ weight.T + bias)
        if m is not None:
            h = h + m
        return jax.nn.softmax(h, axis=1)

    def check(x, m=None):
        out = linear_edge_classifier(x, weight, bias, mask=m)
        jax.block_until_ready(out)
        r = ref(x, m)
        assert out.shape == r.shape
        assert bool(jnp.allclose(out.sum(axis=1), 1.0, atol=1e-5))
        err = float(jnp.max(jnp.abs(out - r)))
        assert err < 1e-4, err

    # 1) tiny, unaligned N (pads 16 -> 128 edges), with and without mask.
    x1 = q(jax.random.normal(k1, (16, in_channels), jnp.float32))
    m1 = q(jax.random.normal(k2, (16, out_channels), jnp.float32))
    check(x1)
    check(x1, m1)

    # 2) unaligned N spanning several packed rows (300 -> 384 edges).
    x2 = q(jax.random.normal(k3, (300, in_channels), jnp.float32))
    m2 = q(jax.random.normal(k4, (300, out_channels), jnp.float32))
    check(x2, m2)

    # 3) 128-aligned N (zero-copy path), multi-step grid that divides evenly
    #    (24 packed rows, tile = 8 rows -> 3 steps).
    x3 = q(jax.random.normal(k5, (3072, in_channels), jnp.float32))
    m3 = q(jax.random.normal(k2, (3072, out_channels), jnp.float32))
    check(x3)
    check(x3, m3)

    # 4) 128-aligned N with a partial final block (20 rows, tile = 8 rows).
    x4 = q(jax.random.normal(k4, (2560, in_channels), jnp.float32))
    m4 = q(jax.random.normal(k1, (2560, out_channels), jnp.float32))
    check(x4, m4)

    print("KERNEL_OK")
</pallas_src>

<mosaic_0001>
module attributes {stable_mosaic.version = 11 : i64} {
  func.func @kernel(%arg0: i32, %arg1: memref<1x1024xf32, #tpu.memory_space<vmem>>, %arg2: memref<1024x384xf32, #tpu.memory_space<vmem>>, %arg3: memref<1x384xf32, #tpu.memory_space<vmem>>, %arg4: memref<8x384xi32, #tpu.memory_space<vmem>>, %arg5: memref<1x384xf32, #tpu.memory_space<vmem>>) attributes {dimension_semantics = [#tpu.dimension_semantics<parallel>], iteration_bounds = array<i64: 1>, scalar_prefetch = 0 : i64, scratch_operands = 0 : i64, tpu.core_type = #tpu.core_type<tc>, window_params = [{transform_indices = @transform_0, window_bounds = array<i64: 1, 1024>}, {pipeline_mode = #tpu.pipeline_mode<synchronous>, transform_indices = @transform_1, window_bounds = array<i64: 1024, 384>}, {pipeline_mode = #tpu.pipeline_mode<synchronous>, transform_indices = @transform_2, window_bounds = array<i64: 1, 384>}, {pipeline_mode = #tpu.pipeline_mode<synchronous>, transform_indices = @transform_3, window_bounds = array<i64: 8, 384>}, {transform_indices = @transform_4, window_bounds = array<i64: 1, 384>}]} {
    %c0 = arith.constant 0 : index
    %c0_0 = arith.constant 0 : index
    %0 = vector.load %arg1[%c0, %c0_0] : memref<1x1024xf32, #tpu.memory_space<vmem>>, vector<1x1024xf32>
    %c0_1 = arith.constant 0 : index
    %c0_2 = arith.constant 0 : index
    %1 = vector.load %arg2[%c0_1, %c0_2] : memref<1024x384xf32, #tpu.memory_space<vmem>>, vector<1024x384xf32>
    %c0_3 = arith.constant 0 : index
    %c0_4 = arith.constant 0 : index
    %2 = vector.load %arg3[%c0_3, %c0_4] : memref<1x384xf32, #tpu.memory_space<vmem>>, vector<1x384xf32>
    %cst = arith.constant dense<0.000000e+00> : vector<1x384xf32>
    %3 = tpu.matmul %0, %1, %cst {dimension_numbers = #tpu.dot_dimension_numbers<[1], [0], [0], [1], [0, 0, 1, 1], [], []>} : vector<1x1024xf32>, vector<1024x384xf32>, vector<1x384xf32> -> vector<1x384xf32>
    %4 = arith.addf %3, %2 : vector<1x384xf32>
    %cst_5 = arith.constant 0.000000e+00 : f32
    %5 = vector.broadcast %cst_5 : f32 to vector<1x384xf32>
    %6 = arith.maximumf %4, %5 : vector<1x384xf32>
    %c0_6 = arith.constant 0 : index
    %c0_7 = arith.constant 0 : index
    %7 = vector.load %arg4[%c0_6, %c0_7] : memref<8x384xi32, #tpu.memory_space<vmem>>, vector<8x384xi32>
    %8 = vector.extract_strided_slice %7 {offsets = [0, 0], sizes = [1, 384], strides = [1, 1]} : vector<8x384xi32> to vector<1x384xi32>
    %c1_i32 = arith.constant 1 : i32
    %9 = tpu.dynamic_rotate %7 by %c1_i32 dim 1 : vector<8x384xi32>, i32 -> vector<8x384xi32>
    %10 = vector.extract_strided_slice %9 {offsets = [0, 0], sizes = [1, 384], strides = [1, 1]} : vector<8x384xi32> to vector<1x384xi32>
    %11 = arith.cmpi eq, %10, %8 : vector<1x384xi32>
    %c1_i32_8 = arith.constant 1 : i32
    %12 = tpu.dynamic_rotate %6 by %c1_i32_8 dim 1 : vector<1x384xf32>, i32 -> vector<1x384xf32>
    %cst_9 = arith.constant 0xFF800000 : f32
    %13 = vector.broadcast %cst_9 : f32 to vector<1x384xf32>
    %14 = arith.select %11, %12, %13 : vector<1x384xi1>, vector<1x384xf32>
    %15 = arith.maximumf %6, %14 : vector<1x384xf32>
    %c2_i32 = arith.constant 2 : i32
    %16 = tpu.dynamic_rotate %7 by %c2_i32 dim 1 : vector<8x384xi32>, i32 -> vector<8x384xi32>
    %17 = vector.extract_strided_slice %16 {offsets = [0, 0], sizes = [1, 384], strides = [1, 1]} : vector<8x384xi32> to vector<1x384xi32>
    %18 = arith.cmpi eq, %17, %8 : vector<1x384xi32>
    %c2_i32_10 = arith.constant 2 : i32
    %19 = tpu.dynamic_rotate %6 by %c2_i32_10 dim 1 : vector<1x384xf32>, i32 -> vector<1x384xf32>
    %cst_11 = arith.constant 0xFF800000 : f32
    %20 = vector.broadcast %cst_11 : f32 to vector<1x384xf32>
    %21 = arith.select %18, %19, %20 : vector<1x384xi1>, vector<1x384xf32>
    %22 = arith.maximumf %15, %21 : vector<1x384xf32>
    %c383_i32 = arith.constant 383 : i32
    %23 = tpu.dynamic_rotate %7 by %c383_i32 dim 1 : vector<8x384xi32>, i32 -> vector<8x384xi32>
    %24 = vector.extract_strided_slice %23 {offsets = [0, 0], sizes = [1, 384], strides = [1, 1]} : vector<8x384xi32> to vector<1x384xi32>
    %25 = arith.cmpi eq, %24, %8 : vector<1x384xi32>
    %c383_i32_12 = arith.constant 383 : i32
    %26 = tpu.dynamic_rotate %6 by %c383_i32_12 dim 1 : vector<1x384xf32>, i32 -> vector<1x384xf32>
    %cst_13 = arith.constant 0xFF800000 : f32
    %27 = vector.broadcast %cst_13 : f32 to vector<1x384xf32>
    %28 = arith.select %25, %26, %27 : vector<1x384xi1>, vector<1x384xf32>
    %29 = arith.maximumf %22, %28 : vector<1x384xf32>
    %c382_i32 = arith.constant 382 : i32
    %30 = tpu.dynamic_rotate %7 by %c382_i32 dim 1 : vector<8x384xi32>, i32 -> vector<8x384xi32>
    %31 = vector.extract_strided_slice %30 {offsets = [0, 0], sizes = [1, 384], strides = [1, 1]} : vector<8x384xi32> to vector<1x384xi32>
    %32 = arith.cmpi eq, %31, %8 : vector<1x384xi32>
    %c382_i32_14 = arith.constant 382 : i32
    %33 = tpu.dynamic_rotate %6 by %c382_i32_14 dim 1 : vector<1x384xf32>, i32 -> vector<1x384xf32>
    %cst_15 = arith.constant 0xFF800000 : f32
    %34 = vector.broadcast %cst_15 : f32 to vector<1x384xf32>
    %35 = arith.select %32, %33, %34 : vector<1x384xi1>, vector<1x384xf32>
    %36 = arith.maximumf %29, %35 : vector<1x384xf32>
    %37 = arith.subf %6, %36 : vector<1x384xf32>
    %38 = math.exp %37 : vector<1x384xf32>
    %c1_i32_16 = arith.constant 1 : i32
    %39 = tpu.dynamic_rotate %38 by %c1_i32_16 dim 1 : vector<1x384xf32>, i32 -> vector<1x384xf32>
    %cst_17 = arith.constant 0.000000e+00 : f32
    %40 = vector.broadcast %cst_17 : f32 to vector<1x384xf32>
    %41 = arith.select %11, %39, %40 : vector<1x384xi1>, vector<1x384xf32>
    %42 = arith.addf %38, %41 : vector<1x384xf32>
    %c2_i32_18 = arith.constant 2 : i32
    %43 = tpu.dynamic_rotate %38 by %c2_i32_18 dim 1 : vector<1x384xf32>, i32 -> vector<1x384xf32>
    %cst_19 = arith.constant 0.000000e+00 : f32
    %44 = vector.broadcast %cst_19 : f32 to vector<1x384xf32>
    %45 = arith.select %18, %43, %44 : vector<1x384xi1>, vector<1x384xf32>
    %46 = arith.addf %42, %45 : vector<1x384xf32>
    %c383_i32_20 = arith.constant 383 : i32
    %47 = tpu.dynamic_rotate %38 by %c383_i32_20 dim 1 : vector<1x384xf32>, i32 -> vector<1x384xf32>
    %cst_21 = arith.constant 0.000000e+00 : f32
    %48 = vector.broadcast %cst_21 : f32 to vector<1x384xf32>
    %49 = arith.select %25, %47, %48 : vector<1x384xi1>, vector<1x384xf32>
    %50 = arith.addf %46, %49 : vector<1x384xf32>
    %c382_i32_22 = arith.constant 382 : i32
    %51 = tpu.dynamic_rotate %38 by %c382_i32_22 dim 1 : vector<1x384xf32>, i32 -> vector<1x384xf32>
    %cst_23 = arith.constant 0.000000e+00 : f32
    %52 = vector.broadcast %cst_23 : f32 to vector<1x384xf32>
    %53 = arith.select %32, %51, %52 : vector<1x384xi1>, vector<1x384xf32>
    %54 = arith.addf %50, %53 : vector<1x384xf32>
    %55 = arith.divf %38, %54 : vector<1x384xf32>
    %c0_24 = arith.constant 0 : index
    %c0_25 = arith.constant 0 : index
    %56 = vector.load %arg5[%c0_24, %c0_25] : memref<1x384xf32, #tpu.memory_space<vmem>>, vector<1x384xf32>
    tpu.vector_store %arg5[%c0_24, %c0_25], %55 {strides = array<i32>} : memref<1x384xf32, #tpu.memory_space<vmem>>, vector<1x384xf32>,
    return
  }
  func.func @transform_0(%arg0: i32) -> (i32, i32) {
    %c0_i32 = arith.constant 0 : i32
    %c0_i32_0 = arith.constant 0 : i32
    return %arg0, %c0_i32 : i32, i32
  }
  func.func @transform_1(%arg0: i32) -> (i32, i32) {
    %c0_i32 = arith.constant 0 : i32
    %c0_i32_0 = arith.constant 0 : i32
    %c0_i32_1 = arith.constant 0 : i32
    return %c0_i32, %c0_i32_0 : i32, i32
  }
  func.func @transform_2(%arg0: i32) -> (i32, i32) {
    %c0_i32 = arith.constant 0 : i32
    %c0_i32_0 = arith.constant 0 : i32
    %c0_i32_1 = arith.constant 0 : i32
    return %c0_i32, %c0_i32_0 : i32, i32
  }
  func.func @transform_3(%arg0: i32) -> (i32, i32) {
    %c0_i32 = arith.constant 0 : i32
    %c0_i32_0 = arith.constant 0 : i32
    %c0_i32_1 = arith.constant 0 : i32
    return %c0_i32, %c0_i32_0 : i32, i32
  }
  func.func @transform_4(%arg0: i32) -> (i32, i32) {
    %c0_i32 = arith.constant 0 : i32
    %c0_i32_0 = arith.constant 0 : i32
    return %arg0, %c0_i32 : i32, i32
  }
}

</mosaic_0001>

<bundles_post_ra>
// kernel: tpu_custom_call.1
= control target key start
LH: loop header
LB: loop body
LE: loop exit
PB: predicated region body
PF: predicated region fallthrough
CT: control target
= control target key end

     0   :  { %9 = vsyncpa [#allocation3], 0  ;;  %s2014_s0 = inlined_call_operand.hbm [shape: f32[1,1024], index: 0, kind: input, shape index: {}]   ;;  %s2015_s1 = inlined_call_operand.hbm [shape: f32[1024,384], index: 1, kind: input, shape index: {}]   ;;  %s2016_s2 = inlined_call_operand.hbm [shape: f32[1,384], index: 2, kind: input, shape index: {}]   ;;  %s2017_s3 = inlined_call_operand.hbm [shape: s32[8,384], index: 3, kind: input, shape index: {}]   ;;  %s2018_s4 = inlined_call_operand.hbm [shape: f32[1,384], index: 4, kind: output, shape index: {}]  }
   0x1   :  { %10 = vsyncpa [#allocation6], 0 }
   0x2   :  { %11 = vsyncpa [#allocation9], 0 }
   0x3   :  { %12 = vsyncpa [#allocation4], 0  ;;  %s1590_s15 = smov [#allocation5]  }
   0x4   :  { %s28_s16 = sshll.u32 %s1590_s15, 4  ;;  %s29_s16 = int_to_ptr.vmem [resolvable:$true] %s28_s16 }
   0x5   :  { %s1490_s17 = scalar_lea.vmem %s29_s16, 49152  ;;  %p1495_p1 = scmp.lt.s32.totalorder %s29_s16, %s29_s16 }
   0x6   :  { %p1491_p0 = scmp.ne.s32.totalorder %s29_s16, %s1490_s17  ;;  %p1496_p2 = scmp.lt.s32.totalorder %s1490_s17, %s1490_s17 }
   0x8   :  { %p1497_p3 = por %p1496_p2, %p1495_p1 }
   0xa   :  { %p1498_p4 = pnand %p1497_p3, %p1491_p0 }
   0xc   :  { %1501 = shalt.err (!%p1498_p4)
}
   0xd   :  { %s1591_s18 = smov 384   ;;  %s1592_s19 = smov 24  }
   0xe   :  { %34 = dma.hbm_to_vmem [thread:$0]  %s2015_s1, 49152, %s29_s16, [#allocation6], %s1591_s18, %s1591_s18, %s1592_s19  }
   0xf   :  { %s1593_s22 = smov [#allocation2]   ;;  %s1594_s24 = smov [#allocation7]  }
  0x10   :  { %s19_s23 = sshll.u32 %s1593_s22, 4  ;;  %s41_s25 = sshll.u32 %s1594_s24, 4  ;;  %s20_s23 = int_to_ptr.vmem [resolvable:$true] %s19_s23  ;;  %s42_s25 = int_to_ptr.vmem [resolvable:$true] %s41_s25 }
  0x11   :  { %s1510_s26 = scalar_lea.vmem %s20_s23, 128  ;;  %p1515_p6 = scmp.lt.s32.totalorder %s20_s23, %s20_s23 }
  0x12   :  { %p1511_p5 = scmp.ne.s32.totalorder %s20_s23, %s1510_s26  ;;  %p1516_p7 = scmp.lt.s32.totalorder %s1510_s26, %s1510_s26 }
  0x14   :  { %p1517_p8 = por %p1516_p7, %p1515_p6 }
  0x16   :  { %p1518_p9 = pnand %p1517_p8, %p1511_p5 }
  0x18   :  { %1521 = shalt.err (!%p1518_p9)
}
  0x19   :  { %22 = dma.hbm_to_vmem [thread:$0]  %s2014_s0, 128, %s20_s23, [#allocation3]  }
  0x1a   :  { %s1530_s29 = scalar_lea.vmem %s42_s25, 48  ;;  %s1534_s1 = scalar_lea.vmem %s42_s25, 64 }
  0x1b   :  { %p1531_p10 = scmp.ne.s32.totalorder %s42_s25, %s1530_s29  ;;  %p1535_p11 = scmp.lt.s32.totalorder %s42_s25, %s42_s25 }
  0x1c   :  { %p1536_p12 = scmp.lt.s32.totalorder %s1534_s1, %s1530_s29 }
  0x1e   :  { %p1537_p13 = por %p1536_p12, %p1535_p11 }
  0x20   :  { %p1538_p0 = pnand %p1537_p13, %p1531_p10 }
  0x22   :  { %1541 = shalt.err (!%p1538_p0)
}
  0x23   :  { %44 = dma.hbm_to_vmem [thread:$0]  %s2016_s2, 48, %s42_s25, [#allocation6]  }
  0x24   :  { %s1595_s6 = smov [#allocation8]  }
  0x25   :  { %s51_s7 = sshll.u32 %s1595_s6, 4  ;;  %s52_s7 = int_to_ptr.vmem [resolvable:$true] %s51_s7 }
  0x26   :  { %s1550_s8 = scalar_lea.vmem %s52_s7, 384  ;;  %p1555_p2 = scmp.lt.s32.totalorder %s52_s7, %s52_s7 }
  0x27   :  { %p1551_p1 = scmp.ne.s32.totalorder %s52_s7, %s1550_s8  ;;  %p1556_p3 = scmp.lt.s32.totalorder %s1550_s8, %s1550_s8 }
  0x29   :  { %p1557_p4 = por %p1556_p3, %p1555_p2 }
  0x2b   :  { %p1558_p5 = pnand %p1557_p4, %p1551_p1 }
  0x2d   :  { %1561 = shalt.err (!%p1558_p5)
}
  0x2e   :  { %54 = dma.hbm_to_vmem [thread:$0]  %s2017_s3, 384, %s52_s7, [#allocation9]  }
  0x2f   :  { %1582 = dma.done.wait [#allocation3], 128  }
  0x30   :  { %1583 = vsyncadd [#allocation3], 4294967168 }
  0x31   :  { %1584 = dma.done.wait [#allocation6], 49200  }
  0x32   :  { %1585 = vsyncadd [#allocation6], 4294918096 }
  0x33   :  { %1586 = dma.done.wait [#allocation9], 384  }
  0x34   :  { %1587 = vsyncadd [#allocation9], 4294966912  ;;  %v114_v0 = vld [vmem:[#allocation5 + $0x170] sm:$0xff]  ;;  %v113_v2 = vld [vmem:[#allocation5 + $0x168] sm:$0xff]  ;;  %s1596_s2 = smov 1   ;;  %s1597_s3 = smov 2  }
  0x35   :  { %v210_v1 = vld [vmem:[#allocation5 + $0x470] sm:$0xff]  ;;  %510 = vmatprep.subr.mxu0 %v114_v0  ;;  %v209_v3 = vld [vmem:[#allocation5 + $0x468] sm:$0xff]  ;;  %v111_v4 = vld [vmem:[#allocation5 + $0x158] sm:$0xff]  ;;  %s1598_s10 = smov 127   ;;  %s1599_s11 = smov 126  }
  0x36   :  { %581 = vmatprep.subr.mxu1 %v210_v1  ;;  %v207_v5 = vld [vmem:[#allocation5 + $0x458] sm:$0xff]  ;;  %511 = vmatpush1.msra.mxu0 %v113_v2  ;;  %v110_v6 = vld [vmem:[#allocation5 + $0x150] sm:$0xff]  ;;  %v108_v8 = vld [vmem:[#allocation5 + $0x140] sm:$0xff]  ;;  %s1601_s12 = smov [#allocation10]  }
  0x37   :  { %582 = vmatpush1.msra.mxu1 %v209_v3  ;;  %v206_v7 = vld [vmem:[#allocation5 + $0x450] sm:$0xff]  ;;  %512 = vmatprep.subr.mxu0 %v111_v4  ;;  %v204_v9 = vld [vmem:[#allocation5 + $0x440] sm:$0xff]  ;;  %v107_v10 = vld [vmem:[#allocation5 + $0x138] sm:$0xff]  ;;  %s1307_s13 = sshll.u32 %s1601_s12, 4  ;;  %s1308_s13 = int_to_ptr.vmem [resolvable:$true] %s1307_s13 }
  0x38   :  { %583 = vmatprep.subr.mxu1 %v207_v5  ;;  %v203_v11 = vld [vmem:[#allocation5 + $0x438] sm:$0xff]  ;;  %513 = vmatpush1.msra.mxu0 %v110_v6  ;;  %v105_v12 = vld [vmem:[#allocation5 + $0x128] sm:$0xff]  ;;  %v104_v14 = vld [vmem:[#allocation5 + $0x120] sm:$0xff]  ;;  %s1562_s14 = scalar_lea.vmem %s1308_s13, 48  ;;  %s1566_s15 = scalar_lea.vmem %s1308_s13, 64 }
  0x39   :  { %584 = vmatpush1.msra.mxu1 %v206_v7  ;;  %v201_v13 = vld [vmem:[#allocation5 + $0x428] sm:$0xff]  ;;  %514 = vmatprep.subr.mxu0 %v108_v8  ;;  %v200_v15 = vld [vmem:[#allocation5 + $0x420] sm:$0xff]  ;;  %v102_v16 = vld [vmem:[#allocation5 + $0x110] sm:$0xff]  ;;  %p1563_p6 = scmp.ne.s32.totalorder %s1308_s13, %s1562_s14  ;;  %p1567_p7 = scmp.lt.s32.totalorder %s1308_s13, %s1308_s13 }
  0x3a   :  { %585 = vmatprep.subr.mxu1 %v204_v9  ;;  %515 = vmatpush1.msra.mxu0 %v107_v10  ;;  %v198_v17 = vld [vmem:[#allocation5 + $0x410] sm:$0xff]  ;;  %v101_v18 = vld [vmem:[#allocation5 + $0x108] sm:$0xff]  ;;  %v99_v20 = vld [vmem:[#allocation5 + $0xf8] sm:$0xff]  ;;  %p1568_p8 = scmp.lt.s32.totalorder %s1566_s15, %s1562_s14 }
  0x3b   :  { %586 = vmatpush1.msra.mxu1 %v203_v11  ;;  %516 = vmatprep.subr.mxu0 %v105_v12  ;;  %v197_v19 = vld [vmem:[#allocation5 + $0x408] sm:$0xff]  ;;  %v195_v21 = vld [vmem:[#allocation5 + $0x3f8] sm:$0xff]  ;;  %v98_v22 = vld [vmem:[#allocation5 + $0xf0] sm:$0xff] }
  0x3c   :  { %587 = vmatprep.subr.mxu1 %v201_v13  ;;  %517 = vmatpush1.msra.mxu0 %v104_v14  ;;  %v194_v23 = vld [vmem:[#allocation5 + $0x3f0] sm:$0xff]  ;;  %v96_v24 = vld [vmem:[#allocation5 + $0xe0] sm:$0xff]  ;;  %v95_v26 = vld [vmem:[#allocation5 + $0xd8] sm:$0xff]  ;;  %p1569_p9 = por %p1568_p8, %p1567_p7 }
  0x3d   :  { %588 = vmatpush1.msra.mxu1 %v200_v15  ;;  %518 = vmatprep.subr.mxu0 %v102_v16  ;;  %v192_v25 = vld [vmem:[#allocation5 + $0x3e0] sm:$0xff]  ;;  %v191_v27 = vld [vmem:[#allocation5 + $0x3d8] sm:$0xff]  ;;  %v93_v28 = vld [vmem:[#allocation5 + $0xc8] sm:$0xff] }
  0x3e   :  { %589 = vmatprep.subr.mxu1 %v198_v17  ;;  %519 = vmatpush1.msra.mxu0 %v101_v18  ;;  %v189_v29 = vld [vmem:[#allocation5 + $0x3c8] sm:$0xff]  ;;  %v92_v30 = vld [vmem:[#allocation5 + $0xc0] sm:$0xff]  ;;  %v90_v32 = vld [vmem:[#allocation5 + $0xb0] sm:$0xff]  ;;  %p1570_p10 = pnand %p1569_p9, %p1563_p6 }
  0x3f   :  { %590 = vmatpush1.msra.mxu1 %v197_v19  ;;  %520 = vmatprep.subr.mxu0 %v99_v20  ;;  %v188_v31 = vld [vmem:[#allocation5 + $0x3c0] sm:$0xff]  ;;  %v186_v33 = vld [vmem:[#allocation5 + $0x3b0] sm:$0xff]  ;;  %v89_v34 = vld [vmem:[#allocation5 + $0xa8] sm:$0xff] }
  0x40   :  { %591 = vmatprep.subr.mxu1 %v195_v21  ;;  %521 = vmatpush1.msra.mxu0 %v98_v22  ;;  %v185_v35 = vld [vmem:[#allocation5 + $0x3a8] sm:$0xff]  ;;  %v87_v36 = vld [vmem:[#allocation5 + $0x98] sm:$0xff]  ;;  %v86_v38 = vld [vmem:[#allocation5 + $0x90] sm:$0xff] }
  0x41   :  { %592 = vmatpush1.msra.mxu1 %v194_v23  ;;  %522 = vmatprep.subr.mxu0 %v96_v24  ;;  %v183_v37 = vld [vmem:[#allocation5 + $0x398] sm:$0xff]  ;;  %v182_v39 = vld [vmem:[#allocation5 + $0x390] sm:$0xff]  ;;  %v84_v40 = vld [vmem:[#allocation5 + $0x80] sm:$0xff] }
  0x42   :  { %593 = vmatprep.subr.mxu1 %v192_v25  ;;  %523 = vmatpush1.msra.mxu0 %v95_v26  ;;  %v180_v41 = vld [vmem:[#allocation5 + $0x380] sm:$0xff]  ;;  %v83_v42 = vld [vmem:[#allocation5 + $0x78] sm:$0xff]  ;;  %v81_v44 = vld [vmem:[#allocation5 + $0x68] sm:$0xff] }
  0x43   :  { %594 = vmatpush1.msra.mxu1 %v191_v27  ;;  %524 = vmatprep.subr.mxu0 %v93_v28  ;;  %v179_v43 = vld [vmem:[#allocation5 + $0x378] sm:$0xff]  ;;  %v177_v45 = vld [vmem:[#allocation5 + $0x368] sm:$0xff]  ;;  %v80_v46 = vld [vmem:[#allocation5 + $0x60] sm:$0xff] }
  0x44   :  { %595 = vmatprep.subr.mxu1 %v189_v29  ;;  %525 = vmatpush1.msra.mxu0 %v92_v30  ;;  %v176_v47 = vld [vmem:[#allocation5 + $0x360] sm:$0xff]  ;;  %v78_v48 = vld [vmem:[#allocation5 + $0x50] sm:$0xff]  ;;  %v77_v50 = vld [vmem:[#allocation5 + $0x48] sm:$0xff] }
  0x45   :  { %596 = vmatpush1.msra.mxu1 %v188_v31  ;;  %526 = vmatprep.subr.mxu0 %v90_v32  ;;  %v174_v49 = vld [vmem:[#allocation5 + $0x350] sm:$0xff]  ;;  %v173_v51 = vld [vmem:[#allocation5 + $0x348] sm:$0xff]  ;;  %v75_v52 = vld [vmem:[#allocation5 + $0x38] sm:$0xff] }
  0x46   :  { %597 = vmatprep.subr.mxu1 %v186_v33  ;;  %527 = vmatpush1.msra.mxu0 %v89_v34  ;;  %v171_v53 = vld [vmem:[#allocation5 + $0x338] sm:$0xff]  ;;  %v74_v54 = vld [vmem:[#allocation5 + $0x30] sm:$0xff]  ;;  %v72_v56 = vld [vmem:[#allocation5 + $0x20] sm:$0xff] }
  0x47   :  { %598 = vmatpush1.msra.mxu1 %v185_v35  ;;  %528 = vmatprep.subr.mxu0 %v87_v36  ;;  %v170_v55 = vld [vmem:[#allocation5 + $0x330] sm:$0xff]  ;;  %v168_v57 = vld [vmem:[#allocation5 + $0x320] sm:$0xff]  ;;  %v71_v58 = vld [vmem:[#allocation5 + $0x18] sm:$0xff] }
  0x48   :  { %599 = vmatprep.subr.mxu1 %v183_v37  ;;  %529 = vmatpush1.msra.mxu0 %v86_v38  ;;  %v167_v59 = vld [vmem:[#allocation5 + $0x318] sm:$0xff]  ;;  %v69_v60 = vld [vmem:[#allocation5 + $0x8] sm:$0xff]  ;;  %v68_v62 = vld [vmem:[#allocation5] sm:$0xff]  ;;  %v454_v38 = vlaneseq }
  0x49   :  { %600 = vmatpush1.msra.mxu1 %v182_v39  ;;  %530 = vmatprep.subr.mxu0 %v84_v40  ;;  %v165_v61 = vld [vmem:[#allocation5 + $0x308] sm:$0xff]  ;;  %v164_v63 = vld [vmem:[#allocation5 + $0x300] sm:$0xff]  ;;  %v162_v0 = vld [vmem:[#allocation5 + $0x2f0] sm:$0xff] }
  0x4a   :  { %601 = vmatprep.subr.mxu1 %v180_v41  ;;  %531 = vmatpush1.msra.mxu0 %v83_v42  ;;  %v258_v1 = vld [vmem:[#allocation5 + $0x5f0] sm:$0xff]  ;;  %v161_v2 = vld [vmem:[#allocation5 + $0x2e8] sm:$0xff]  ;;  %v159_v4 = vld [vmem:[#allocation5 + $0x2d8] sm:$0xff] }
  0x4b   :  { %602 = vmatpush1.msra.mxu1 %v179_v43  ;;  %532 = vmatprep.subr.mxu0 %v81_v44  ;;  %v257_v3 = vld [vmem:[#allocation5 + $0x5e8] sm:$0xff]  ;;  %v255_v5 = vld [vmem:[#allocation5 + $0x5d8] sm:$0xff]  ;;  %v158_v6 = vld [vmem:[#allocation5 + $0x2d0] sm:$0xff] }
  0x4c   :  { %603 = vmatprep.subr.mxu1 %v177_v45  ;;  %533 = vmatpush1.msra.mxu0 %v80_v46  ;;  %v254_v7 = vld [vmem:[#allocation5 + $0x5d0] sm:$0xff]  ;;  %v156_v8 = vld [vmem:[#allocation5 + $0x2c0] sm:$0xff]  ;;  %v155_v10 = vld [vmem:[#allocation5 + $0x2b8] sm:$0xff] }
  0x4d   :  { %604 = vmatpush1.msra.mxu1 %v176_v47  ;;  %534 = vmatprep.subr.mxu0 %v78_v48  ;;  %v252_v9 = vld [vmem:[#allocation5 + $0x5c0] sm:$0xff]  ;;  %v251_v11 = vld [vmem:[#allocation5 + $0x5b8] sm:$0xff]  ;;  %v153_v12 = vld [vmem:[#allocation5 + $0x2a8] sm:$0xff]  ;;  %v1640_v47 = vshrl.u32 %v454_v38, 7 }
  0x4e   :  { %605 = vmatprep.subr.mxu1 %v174_v49  ;;  %535 = vmatpush1.msra.mxu0 %v77_v50  ;;  %v249_v13 = vld [vmem:[#allocation5 + $0x5a8] sm:$0xff]  ;;  %v152_v14 = vld [vmem:[#allocation5 + $0x2a0] sm:$0xff]  ;;  %v150_v16 = vld [vmem:[#allocation5 + $0x290] sm:$0xff] }
  0x4f   :  { %606 = vmatpush1.msra.mxu1 %v173_v51  ;;  %536 = vmatprep.subr.mxu0 %v75_v52  ;;  %v248_v15 = vld [vmem:[#allocation5 + $0x5a0] sm:$0xff]  ;;  %v246_v17 = vld [vmem:[#allocation5 + $0x590] sm:$0xff]  ;;  %v149_v18 = vld [vmem:[#allocation5 + $0x288] sm:$0xff] }
  0x50   :  { %607 = vmatprep.subr.mxu1 %v171_v53  ;;  %537 = vmatpush1.msra.mxu0 %v74_v54  ;;  %v245_v19 = vld [vmem:[#allocation5 + $0x588] sm:$0xff]  ;;  %v147_v20 = vld [vmem:[#allocation5 + $0x278] sm:$0xff]  ;;  %v146_v22 = vld [vmem:[#allocation5 + $0x270] sm:$0xff] }
  0x51   :  { %608 = vmatpush1.msra.mxu1 %v170_v55  ;;  %538 = vmatprep.subr.mxu0 %v72_v56  ;;  %v243_v21 = vld [vmem:[#allocation5 + $0x578] sm:$0xff]  ;;  %v242_v23 = vld [vmem:[#allocation5 + $0x570] sm:$0xff]  ;;  %v144_v24 = vld [vmem:[#allocation5 + $0x260] sm:$0xff]  ;;  %v460_v56 = vsub.s32 1, %v1640_v47 }
  0x52   :  { %609 = vmatprep.subr.mxu1 %v168_v57  ;;  %539 = vmatpush1.msra.mxu0 %v71_v58  ;;  %v240_v25 = vld [vmem:[#allocation5 + $0x560] sm:$0xff]  ;;  %v143_v26 = vld [vmem:[#allocation5 + $0x258] sm:$0xff]  ;;  %v141_v28 = vld [vmem:[#allocation5 + $0x248] sm:$0xff] }
  0x53   :  { %610 = vmatpush1.msra.mxu1 %v167_v59  ;;  %540 = vmatprep.subr.mxu0 %v69_v60  ;;  %v239_v27 = vld [vmem:[#allocation5 + $0x558] sm:$0xff]  ;;  %v237_v29 = vld [vmem:[#allocation5 + $0x548] sm:$0xff]  ;;  %v140_v30 = vld [vmem:[#allocation5 + $0x240] sm:$0xff]  ;;  %v456_v60 = vsub.s32 0, %v1640_v47 }
  0x54   :  { %611 = vmatprep.subr.mxu1 %v165_v61  ;;  %541 = vmatpush1.msra.mxu0 %v68_v62  ;;  %v236_v31 = vld [vmem:[#allocation5 + $0x540] sm:$0xff]  ;;  %v138_v32 = vld [vmem:[#allocation5 + $0x230] sm:$0xff]  ;;  %v137_v34 = vld [vmem:[#allocation5 + $0x228] sm:$0xff] }
  0x55   :  { %612 = vmatpush1.msra.mxu1 %v164_v63  ;;  %542 = vmatprep.subr.mxu0 %v162_v0  ;;  %v234_v33 = vld [vmem:[#allocation5 + $0x530] sm:$0xff]  ;;  %v233_v35 = vld [vmem:[#allocation5 + $0x528] sm:$0xff]  ;;  %v135_v36 = vld [vmem:[#allocation5 + $0x218] sm:$0xff]  ;;  %v468_v63 = vsub.s32 3, %v1640_v47 }
  0x56   :  { %613 = vmatprep.subr.mxu1 %v258_v1  ;;  %543 = vmatpush2.msra.mxu0 %v161_v2  ;;  %v231_v37 = vld [vmem:[#allocation5 + $0x518] sm:$0xff]  ;;  %v134_v39 = vld [vmem:[#allocation5 + $0x210] sm:$0xff]  ;;  %v132_v41 = vld [vmem:[#allocation5 + $0x200] sm:$0xff]  ;;  %v464_v2 = vsub.s32 2, %v1640_v47 }
  0x57   :  { %614 = vmatpush2.msra.mxu1 %v257_v3  ;;  %544 = vmatprep.subr.mxu0 %v159_v4  ;;  %v230_v40 = vld [vmem:[#allocation5 + $0x510] sm:$0xff]  ;;  %v228_v42 = vld [vmem:[#allocation5 + $0x500] sm:$0xff]  ;;  %v131_v43 = vld [vmem:[#allocation5 + $0x1f8] sm:$0xff] }
  0x58   :  { %615 = vmatprep.subr.mxu1 %v255_v5  ;;  %545 = vmatpush2.msra.mxu0 %v158_v6  ;;  %v227_v44 = vld [vmem:[#allocation5 + $0x4f8] sm:$0xff]  ;;  %v129_v45 = vld [vmem:[#allocation5 + $0x1e8] sm:$0xff]  ;;  %v128_v48 = vld [vmem:[#allocation5 + $0x1e0] sm:$0xff] }
  0x59   :  { %616 = vmatpush2.msra.mxu1 %v254_v7  ;;  %546 = vmatprep.subr.mxu0 %v156_v8  ;;  %v225_v46 = vld [vmem:[#allocation5 + $0x4e8] sm:$0xff]  ;;  %v224_v49 = vld [vmem:[#allocation5 + $0x4e0] sm:$0xff]  ;;  %v126_v50 = vld [vmem:[#allocation5 + $0x1d0] sm:$0xff] }
  0x5a   :  { %617 = vmatprep.subr.mxu1 %v252_v9  ;;  %547 = vmatpush2.msra.mxu0 %v155_v10  ;;  %v222_v51 = vld [vmem:[#allocation5 + $0x4d0] sm:$0xff]  ;;  %v125_v52 = vld [vmem:[#allocation5 + $0x1c8] sm:$0xff]  ;;  %v123_v54 = vld [vmem:[#allocation5 + $0x1b8] sm:$0xff] }
  0x5b   :  { %618 = vmatpush2.msra.mxu1 %v251_v11  ;;  %548 = vmatprep.subr.mxu0 %v153_v12  ;;  %v221_v53 = vld [vmem:[#allocation5 + $0x4c8] sm:$0xff]  ;;  %v219_v55 = vld [vmem:[#allocation5 + $0x4b8] sm:$0xff]  ;;  %v122_v57 = vld [vmem:[#allocation5 + $0x1b0] sm:$0xff] }
  0x5c   :  { %619 = vmatprep.subr.mxu1 %v249_v13  ;;  %549 = vmatpush2.msra.mxu0 %v152_v14  ;;  %v218_v58 = vld [vmem:[#allocation5 + $0x4b0] sm:$0xff]  ;;  %v1643_v59 = vld [vmem:[#allocation2] sm:$0xff]  ;;  %v120_v61 = vld [vmem:[#allocation5 + $0x1a0] sm:$0xff] }
  0x5d   :  { %620 = vmatpush2.msra.mxu1 %v248_v15  ;;  %550 = vmatprep.subr.mxu0 %v150_v16  ;;  %v216_v62 = vld [vmem:[#allocation5 + $0x4a0] sm:$0xff]  ;;  %v119_v0 = vld [vmem:[#allocation5 + $0x198] sm:$0xff]  ;;  %v117_v3 = vld [vmem:[#allocation5 + $0x188] sm:$0xff]  ;;  %v1651_v5 = vrot.slane %v1643_v59, %v460_v56  ;;  %v1656_v7 = vrot.slane %v1643_v59, %v456_v60  ;;  %v1659_v9 = vrot.slane %v1643_v59, %v468_v63 }
  0x5e   :  { %621 = vmatprep.subr.mxu1 %v246_v17  ;;  %551 = vmatpush2.msra.mxu0 %v149_v18  ;;  %v215_v1 = vld [vmem:[#allocation5 + $0x498] sm:$0xff]  ;;  %v213_v4 = vld [vmem:[#allocation5 + $0x488] sm:$0xff]  ;;  %v116_v6 = vld [vmem:[#allocation5 + $0x180] sm:$0xff]  ;;  %v1664_v11 = vrot.slane %v1643_v59, %v464_v2 }
  0x5f   :  { %622 = vmatpush2.msra.mxu1 %v245_v19  ;;  %552 = vmatprep.subr.mxu0 %v147_v20  ;;  %v212_v8 = vld [vmem:[#allocation5 + $0x480] sm:$0xff]  ;;  %v306_v10 = vld [vmem:[#allocation5 + $0x770] sm:$0xff]  ;;  %v305_v13 = vld [vmem:[#allocation5 + $0x768] sm:$0xff] }
  0x60   :  { %623 = vmatprep.subr.mxu1 %v243_v21  ;;  %553 = vmatpush2.msra.mxu0 %v146_v22  ;;  %v402_v12 = vld [vmem:[#allocation5 + $0xa70] sm:$0xff]  ;;  %v401_v14 = vld [vmem:[#allocation5 + $0xa68] sm:$0xff]  ;;  %v303_v15 = vld [vmem:[#allocation5 + $0x758] sm:$0xff] }
  0x61   :  { %624 = vmatpush2.msra.mxu1 %v242_v23  ;;  %554 = vmatprep.subr.mxu0 %v144_v24  ;;  %v399_v16 = vld [vmem:[#allocation5 + $0xa58] sm:$0xff]  ;;  %v302_v17 = vld [vmem:[#allocation5 + $0x750] sm:$0xff]  ;;  %v300_v19 = vld [vmem:[#allocation5 + $0x740] sm:$0xff] }
  0x62   :  { %625 = vmatprep.subr.mxu1 %v240_v25  ;;  %555 = vmatpush2.msra.mxu0 %v143_v26  ;;  %v398_v18 = vld [vmem:[#allocation5 + $0xa50] sm:$0xff]  ;;  %v396_v20 = vld [vmem:[#allocation5 + $0xa40] sm:$0xff]  ;;  %v299_v21 = vld [vmem:[#allocation5 + $0x738] sm:$0xff] }
  0x63   :  { %626 = vmatpush2.msra.mxu1 %v239_v27  ;;  %556 = vmatprep.subr.mxu0 %v141_v28  ;;  %v395_v22 = vld [vmem:[#allocation5 + $0xa38] sm:$0xff]  ;;  %v297_v23 = vld [vmem:[#allocation5 + $0x728] sm:$0xff]  ;;  %v296_v25 = vld [vmem:[#allocation5 + $0x720] sm:$0xff] }
  0x64   :  { %627 = vmatprep.subr.mxu1 %v237_v29  ;;  %557 = vmatpush2.msra.mxu0 %v140_v30  ;;  %v393_v24 = vld [vmem:[#allocation5 + $0xa28] sm:$0xff]  ;;  %v392_v26 = vld [vmem:[#allocation5 + $0xa20] sm:$0xff]  ;;  %v294_v27 = vld [vmem:[#allocation5 + $0x710] sm:$0xff] }
  0x65   :  { %628 = vmatpush2.msra.mxu1 %v236_v31  ;;  %558 = vmatprep.subr.mxu0 %v138_v32  ;;  %v390_v28 = vld [vmem:[#allocation5 + $0xa10] sm:$0xff]  ;;  %v293_v29 = vld [vmem:[#allocation5 + $0x708] sm:$0xff]  ;;  %v291_v31 = vld [vmem:[#allocation5 + $0x6f8] sm:$0xff] }
  0x66   :  { %629 = vmatprep.subr.mxu1 %v234_v33  ;;  %559 = vmatpush2.msra.mxu0 %v137_v34  ;;  %v389_v30 = vld [vmem:[#allocation5 + $0xa08] sm:$0xff]  ;;  %v387_v32 = vld [vmem:[#allocation5 + $0x9f8] sm:$0xff]  ;;  %v290_v33 = vld [vmem:[#allocation5 + $0x6f0] sm:$0xff] }
  0x67   :  { %630 = vmatpush2.msra.mxu1 %v233_v35  ;;  %560 = vmatprep.subr.mxu0 %v135_v36  ;;  %v386_v34 = vld [vmem:[#allocation5 + $0x9f0] sm:$0xff]  ;;  %v288_v35 = vld [vmem:[#allocation5 + $0x6e0] sm:$0xff] }
  0x68   :  { %631 = vmatprep.subr.mxu1 %v231_v37  ;;  %561 = vmatpush2.msra.mxu0 %v134_v39  ;;  %v384_v36 = vld [vmem:[#allocation5 + $0x9e0] sm:$0xff]  ;;  %v287_v37 = vld [vmem:[#allocation5 + $0x6d8] sm:$0xff] }
  0x69   :  { %632 = vmatpush2.msra.mxu1 %v230_v40  ;;  %562 = vmatprep.subr.mxu0 %v132_v41  ;;  %v383_v39 = vld [vmem:[#allocation5 + $0x9d8] sm:$0xff]  ;;  %v285_v40 = vld [vmem:[#allocation5 + $0x6c8] sm:$0xff]  ;;  %v368_v63 = vld [vmem:[#allocation5 + $0x960] sm:$0xff] }
  0x6a   :  { %633 = vmatprep.subr.mxu1 %v228_v42  ;;  %563 = vmatpush2.msra.mxu0 %v131_v43  ;;  %v381_v41 = vld [vmem:[#allocation5 + $0x9c8] sm:$0xff]  ;;  %v284_v42 = vld [vmem:[#allocation5 + $0x6c0] sm:$0xff] }
  0x6b   :  { %634 = vmatpush2.msra.mxu1 %v227_v44  ;;  %564 = vmatprep.subr.mxu0 %v129_v45  ;;  %v380_v43 = vld [vmem:[#allocation5 + $0x9c0] sm:$0xff]  ;;  %v282_v44 = vld [vmem:[#allocation5 + $0x6b0] sm:$0xff] }
  0x6c   :  { %635 = vmatprep.subr.mxu1 %v225_v46  ;;  %565 = vmatpush2.msra.mxu0 %v128_v48  ;;  %v378_v45 = vld [vmem:[#allocation5 + $0x9b0] sm:$0xff]  ;;  %v281_v46 = vld [vmem:[#allocation5 + $0x6a8] sm:$0xff] }
  0x6d   :  { %636 = vmatpush2.msra.mxu1 %v224_v49  ;;  %566 = vmatprep.subr.mxu0 %v126_v50  ;;  %v377_v48 = vld [vmem:[#allocation5 + $0x9a8] sm:$0xff]  ;;  %v279_v49 = vld [vmem:[#allocation5 + $0x698] sm:$0xff] }
  0x6e   :  { %637 = vmatprep.subr.mxu1 %v222_v51  ;;  %567 = vmatpush2.msra.mxu0 %v125_v52  ;;  %v375_v50 = vld [vmem:[#allocation5 + $0x998] sm:$0xff]  ;;  %v278_v51 = vld [vmem:[#allocation5 + $0x690] sm:$0xff] }
  0x6f   :  { %638 = vmatpush2.msra.mxu1 %v221_v53  ;;  %568 = vmatprep.subr.mxu0 %v123_v54  ;;  %v374_v52 = vld [vmem:[#allocation5 + $0x990] sm:$0xff]  ;;  %v276_v53 = vld [vmem:[#allocation5 + $0x680] sm:$0xff] }
  0x70   :  { %639 = vmatprep.subr.mxu1 %v219_v55  ;;  %569 = vmatpush2.msra.mxu0 %v122_v57  ;;  %v372_v54 = vld [vmem:[#allocation5 + $0x980] sm:$0xff]  ;;  %v275_v55 = vld [vmem:[#allocation5 + $0x678] sm:$0xff] }
  0x71   :  { %640 = vmatpush2.msra.mxu1 %v218_v58  ;;  %570 = vmatprep.subr.mxu0 %v120_v61  ;;  %v371_v57 = vld [vmem:[#allocation5 + $0x978] sm:$0xff]  ;;  %v273_v58 = vld [vmem:[#allocation5 + $0x668] sm:$0xff] }
  0x72   :  { %641 = vmatprep.subr.mxu1 %v216_v62  ;;  %571 = vmatpush2.msra.mxu0 %v119_v0  ;;  %v369_v61 = vld [vmem:[#allocation5 + $0x968] sm:$0xff]  ;;  %v272_v62 = vld [vmem:[#allocation5 + $0x660] sm:$0xff]  ;;  %v270_v0 = vld [vmem:[#allocation5 + $0x650] sm:$0xff] }
  0x73   :  { %642 = vmatpush2.msra.mxu1 %v215_v1  ;;  %572 = vmatprep.subr.mxu0 %v117_v3  ;;  %v366_v1 = vld [vmem:[#allocation5 + $0x950] sm:$0xff]  ;;  %v269_v3 = vld [vmem:[#allocation5 + $0x648] sm:$0xff] }
  0x74   :  { %643 = vmatprep.subr.mxu1 %v213_v4  ;;  %573 = vmatpush2.msra.mxu0 %v116_v6  ;;  %v365_v4 = vld [vmem:[#allocation5 + $0x948] sm:$0xff]  ;;  %v267_v6 = vld [vmem:[#allocation5 + $0x638] sm:$0xff] }
  0x75   :  { %574 = vmatprep.mubr.f32.mxu0 %v1651_v5  ;;  %644 = vmatpush2.msra.mxu1 %v212_v8  ;;  %v363_v8 = vld [vmem:[#allocation5 + $0x938] sm:$0xff] }
  0x76   :  { %575 = vmatmul.mubr.f32.vlgmr.msra.gmra.mxu0 %v1656_v7  ;;  %645 = vmatprep.mubr.f32.mxu1 %v1659_v9 }
  0x77   :  { %652 = vmatprep.subr.mxu0 %v306_v10  ;;  %723 = vmatprep.subr.mxu1 %v402_v12  ;;  %v266_v10 = vld [vmem:[#allocation5 + $0x630] sm:$0xff] }
  0x78   :  { %646 = vmatmul.mubr.f32.vlgmr.msra.gmra.mxu1 %v1664_v11  ;;  %653 = vmatpush1.msra.mxu0 %v305_v13  ;;  %v362_v12 = vld [vmem:[#allocation5 + $0x930] sm:$0xff]  ;;  %v264_v13 = vld [vmem:[#allocation5 + $0x620] sm:$0xff] }
  0x79   :  { %724 = vmatpush1.msra.mxu1 %v401_v14  ;;  %654 = vmatprep.subr.mxu0 %v303_v15  ;;  %v360_v14 = vld [vmem:[#allocation5 + $0x920] sm:$0xff]  ;;  %v263_v15 = vld [vmem:[#allocation5 + $0x618] sm:$0xff] }
  0x7a   :  { %725 = vmatprep.subr.mxu1 %v399_v16  ;;  %655 = vmatpush1.msra.mxu0 %v302_v17  ;;  %v359_v16 = vld [vmem:[#allocation5 + $0x918] sm:$0xff]  ;;  %v261_v17 = vld [vmem:[#allocation5 + $0x608] sm:$0xff] }
  0x7b   :  { %726 = vmatpush1.msra.mxu1 %v398_v18  ;;  %656 = vmatprep.subr.mxu0 %v300_v19  ;;  %v357_v18 = vld [vmem:[#allocation5 + $0x908] sm:$0xff]  ;;  %v260_v19 = vld [vmem:[#allocation5 + $0x600] sm:$0xff] }
  0x7c   :  { %727 = vmatprep.subr.mxu1 %v396_v20  ;;  %657 = vmatpush1.msra.mxu0 %v299_v21  ;;  %v356_v20 = vld [vmem:[#allocation5 + $0x900] sm:$0xff]  ;;  %v354_v21 = vld [vmem:[#allocation5 + $0x8f0] sm:$0xff] }
  0x7d   :  { %728 = vmatpush1.msra.mxu1 %v395_v22  ;;  %658 = vmatprep.subr.mxu0 %v297_v23  ;;  %v450_v22 = vld [vmem:[#allocation5 + $0xbf0] sm:$0xff]  ;;  %v353_v23 = vld [vmem:[#allocation5 + $0x8e8] sm:$0xff] }
  0x7e   :  { %729 = vmatprep.subr.mxu1 %v393_v24  ;;  %659 = vmatpush1.msra.mxu0 %v296_v25  ;;  %v449_v24 = vld [vmem:[#allocation5 + $0xbe8] sm:$0xff]  ;;  %v351_v25 = vld [vmem:[#allocation5 + $0x8d8] sm:$0xff] }
  0x7f   :  { %730 = vmatpush1.msra.mxu1 %v392_v26  ;;  %660 = vmatprep.subr.mxu0 %v294_v27  ;;  %v447_v26 = vld [vmem:[#allocation5 + $0xbd8] sm:$0xff]  ;;  %v350_v27 = vld [vmem:[#allocation5 + $0x8d0] sm:$0xff] }
  0x80   :  { %731 = vmatprep.subr.mxu1 %v390_v28  ;;  %661 = vmatpush1.msra.mxu0 %v293_v29  ;;  %v446_v28 = vld [vmem:[#allocation5 + $0xbd0] sm:$0xff]  ;;  %v348_v29 = vld [vmem:[#allocation5 + $0x8c0] sm:$0xff] }
  0x81   :  { %732 = vmatpush1.msra.mxu1 %v389_v30  ;;  %662 = vmatprep.subr.mxu0 %v291_v31  ;;  %v444_v30 = vld [vmem:[#allocation5 + $0xbc0] sm:$0xff]  ;;  %v347_v31 = vld [vmem:[#allocation5 + $0x8b8] sm:$0xff] }
  0x82   :  { %733 = vmatprep.subr.mxu1 %v387_v32  ;;  %663 = vmatpush1.msra.mxu0 %v290_v33  ;;  %v443_v32 = vld [vmem:[#allocation5 + $0xbb8] sm:$0xff]  ;;  %v345_v33 = vld [vmem:[#allocation5 + $0x8a8] sm:$0xff] }
  0x83   :  { %734 = vmatpush1.msra.mxu1 %v386_v34  ;;  %664 = vmatprep.subr.mxu0 %v288_v35  ;;  %v441_v34 = vld [vmem:[#allocation5 + $0xba8] sm:$0xff]  ;;  %v344_v35 = vld [vmem:[#allocation5 + $0x8a0] sm:$0xff] }
  0x84   :  { %735 = vmatprep.subr.mxu1 %v384_v36  ;;  %665 = vmatpush1.msra.mxu0 %v287_v37  ;;  %v440_v36 = vld [vmem:[#allocation5 + $0xba0] sm:$0xff]  ;;  %v342_v37 = vld [vmem:[#allocation5 + $0x890] sm:$0xff] }
  0x85   :  { %736 = vmatpush1.msra.mxu1 %v383_v39  ;;  %666 = vmatprep.subr.mxu0 %v285_v40  ;;  %v438_v39 = vld [vmem:[#allocation5 + $0xb90] sm:$0xff]  ;;  %v341_v40 = vld [vmem:[#allocation5 + $0x888] sm:$0xff] }
  0x86   :  { %737 = vmatprep.subr.mxu1 %v381_v41  ;;  %667 = vmatpush1.msra.mxu0 %v284_v42  ;;  %v437_v41 = vld [vmem:[#allocation5 + $0xb88] sm:$0xff]  ;;  %v339_v42 = vld [vmem:[#allocation5 + $0x878] sm:$0xff] }
  0x87   :  { %738 = vmatpush1.msra.mxu1 %v380_v43  ;;  %668 = vmatprep.subr.mxu0 %v282_v44  ;;  %v435_v43 = vld [vmem:[#allocation5 + $0xb78] sm:$0xff]  ;;  %v338_v44 = vld [vmem:[#allocation5 + $0x870] sm:$0xff] }
  0x88   :  { %739 = vmatprep.subr.mxu1 %v378_v45  ;;  %669 = vmatpush1.msra.mxu0 %v281_v46  ;;  %v434_v45 = vld [vmem:[#allocation5 + $0xb70] sm:$0xff]  ;;  %v336_v46 = vld [vmem:[#allocation5 + $0x860] sm:$0xff] }
  0x89   :  { %740 = vmatpush1.msra.mxu1 %v377_v48  ;;  %670 = vmatprep.subr.mxu0 %v279_v49  ;;  %v432_v48 = vld [vmem:[#allocation5 + $0xb60] sm:$0xff]  ;;  %v335_v49 = vld [vmem:[#allocation5 + $0x858] sm:$0xff] }
  0x8a   :  { %741 = vmatprep.subr.mxu1 %v375_v50  ;;  %671 = vmatpush1.msra.mxu0 %v278_v51  ;;  %v431_v50 = vld [vmem:[#allocation5 + $0xb58] sm:$0xff]  ;;  %v333_v51 = vld [vmem:[#allocation5 + $0x848] sm:$0xff] }
  0x8b   :  { %742 = vmatpush1.msra.mxu1 %v374_v52  ;;  %672 = vmatprep.subr.mxu0 %v276_v53  ;;  %v429_v52 = vld [vmem:[#allocation5 + $0xb48] sm:$0xff]  ;;  %v332_v53 = vld [vmem:[#allocation5 + $0x840] sm:$0xff] }
  0x8c   :  { %743 = vmatprep.subr.mxu1 %v372_v54  ;;  %673 = vmatpush1.msra.mxu0 %v275_v55  ;;  %v428_v54 = vld [vmem:[#allocation5 + $0xb40] sm:$0xff]  ;;  %v330_v55 = vld [vmem:[#allocation5 + $0x830] sm:$0xff] }
  0x8d   :  { %744 = vmatpush1.msra.mxu1 %v371_v57  ;;  %674 = vmatprep.subr.mxu0 %v273_v58  ;;  %v426_v57 = vld [vmem:[#allocation5 + $0xb30] sm:$0xff]  ;;  %v329_v58 = vld [vmem:[#allocation5 + $0x828] sm:$0xff] }
  0x8e   :  { %745 = vmatprep.subr.mxu1 %v369_v61  ;;  %675 = vmatpush1.msra.mxu0 %v272_v62  ;;  %v425_v61 = vld [vmem:[#allocation5 + $0xb28] sm:$0xff]  ;;  %v327_v62 = vld [vmem:[#allocation5 + $0x818] sm:$0xff] }
  0x8f   :  { %746 = vmatpush1.msra.mxu1 %v368_v63  ;;  %676 = vmatprep.subr.mxu0 %v270_v0  ;;  %v423_v63 = vld [vmem:[#allocation5 + $0xb18] sm:$0xff]  ;;  %v326_v0 = vld [vmem:[#allocation5 + $0x810] sm:$0xff] }
  0x90   :  { %747 = vmatprep.subr.mxu1 %v366_v1  ;;  %677 = vmatpush1.msra.mxu0 %v269_v3  ;;  %v422_v1 = vld [vmem:[#allocation5 + $0xb10] sm:$0xff]  ;;  %v324_v3 = vld [vmem:[#allocation5 + $0x800] sm:$0xff] }
  0x91   :  { %748 = vmatpush1.msra.mxu1 %v365_v4  ;;  %678 = vmatprep.subr.mxu0 %v267_v6  ;;  %v420_v4 = vld [vmem:[#allocation5 + $0xb00] sm:$0xff]  ;;  %v323_v6 = vld [vmem:[#allocation5 + $0x7f8] sm:$0xff] }
  0x92   :  { %749 = vmatprep.subr.mxu1 %v363_v8  ;;  %679 = vmatpush1.msra.mxu0 %v266_v10  ;;  %v419_v8 = vld [vmem:[#allocation5 + $0xaf8] sm:$0xff]  ;;  %v321_v10 = vld [vmem:[#allocation5 + $0x7e8] sm:$0xff] }
  0x93   :  { %750 = vmatpush1.msra.mxu1 %v362_v12  ;;  %680 = vmatprep.subr.mxu0 %v264_v13  ;;  %v417_v12 = vld [vmem:[#allocation5 + $0xae8] sm:$0xff]  ;;  %v320_v13 = vld [vmem:[#allocation5 + $0x7e0] sm:$0xff] }
  0x94   :  { %751 = vmatprep.subr.mxu1 %v360_v14  ;;  %681 = vmatpush1.msra.mxu0 %v263_v15  ;;  %v416_v14 = vld [vmem:[#allocation5 + $0xae0] sm:$0xff]  ;;  %v318_v15 = vld [vmem:[#allocation5 + $0x7d0] sm:$0xff] }
  0x95   :  { %752 = vmatpush1.msra.mxu1 %v359_v16  ;;  %682 = vmatprep.subr.mxu0 %v261_v17  ;;  %v414_v16 = vld [vmem:[#allocation5 + $0xad0] sm:$0xff]  ;;  %v317_v17 = vld [vmem:[#allocation5 + $0x7c8] sm:$0xff] }
  0x96   :  { %753 = vmatprep.subr.mxu1 %v357_v18  ;;  %683 = vmatpush1.msra.mxu0 %v260_v19  ;;  %v413_v18 = vld [vmem:[#allocation5 + $0xac8] sm:$0xff]  ;;  %v315_v19 = vld [vmem:[#allocation5 + $0x7b8] sm:$0xff] }
  0x97   :  { %754 = vmatpush1.msra.mxu1 %v356_v20  ;;  %684 = vmatprep.subr.mxu0 %v354_v21  ;;  %v411_v20 = vld [vmem:[#allocation5 + $0xab8] sm:$0xff]  ;;  %v476_v21 = vsub.s32 5, %v1640_v47 }
  0x98   :  { %755 = vmatprep.subr.mxu1 %v450_v22  ;;  %685 = vmatpush2.msra.mxu0 %v353_v23  ;;  %v314_v22 = vld [vmem:[#allocation5 + $0x7b0] sm:$0xff] }
  0x99   :  { %756 = vmatpush2.msra.mxu1 %v449_v24  ;;  %686 = vmatprep.subr.mxu0 %v351_v25  ;;  %v410_v23 = vld [vmem:[#allocation5 + $0xab0] sm:$0xff]  ;;  %v472_v24 = vsub.s32 4, %v1640_v47  ;;  %v312_v25 = vld [vmem:[#allocation5 + $0x7a0] sm:$0xff] }
  0x9a   :  { %757 = vmatprep.subr.mxu1 %v447_v26  ;;  %687 = vmatpush2.msra.mxu0 %v350_v27  ;;  %v408_v26 = vld [vmem:[#allocation5 + $0xaa0] sm:$0xff]  ;;  %v484_v27 = vsub.s32 7, %v1640_v47 }
  0x9b   :  { %758 = vmatpush2.msra.mxu1 %v446_v28  ;;  %688 = vmatprep.subr.mxu0 %v348_v29  ;;  %v311_v28 = vld [vmem:[#allocation5 + $0x798] sm:$0xff] }
  0x9c   :  { %759 = vmatprep.subr.mxu1 %v444_v30  ;;  %689 = vmatpush2.msra.mxu0 %v347_v31  ;;  %v407_v29 = vld [vmem:[#allocation5 + $0xa98] sm:$0xff]  ;;  %v480_v30 = vsub.s32 6, %v1640_v47  ;;  %v309_v31 = vld [vmem:[#allocation5 + $0x788] sm:$0xff] }
  0x9d   :  { %760 = vmatpush2.msra.mxu1 %v443_v32  ;;  %690 = vmatprep.subr.mxu0 %v345_v33  ;;  %v405_v32 = vld [vmem:[#allocation5 + $0xa88] sm:$0xff]  ;;  %v1675_v33 = vrot.slane %v1643_v59, %v476_v21  ;;  %v232_v21 = vld [vmem:[#allocation5 + $0x520] sm:$0xff] }
  0x9e   :  { %761 = vmatprep.subr.mxu1 %v441_v34  ;;  %691 = vmatpush2.msra.mxu0 %v344_v35  ;;  %v308_v34 = vld [vmem:[#allocation5 + $0x780] sm:$0xff]  ;;  %v1678_v35 = vrot.slane %v1643_v59, %v472_v24  ;;  %v133_v24 = vld [vmem:[#allocation5 + $0x208] sm:$0xff] }
  0x9f   :  { %762 = vmatpush2.msra.mxu1 %v440_v36  ;;  %692 = vmatprep.subr.mxu0 %v342_v37  ;;  %v404_v36 = vld [vmem:[#allocation5 + $0xa80] sm:$0xff]  ;;  %v1681_v37 = vrot.slane %v1643_v59, %v484_v27  ;;  %v181_v27 = vld [vmem:[#allocation5 + $0x388] sm:$0xff] }
  0xa0   :  { %763 = vmatprep.subr.mxu1 %v438_v39  ;;  %693 = vmatpush2.msra.mxu0 %v341_v40  ;;  %v163_v39 = vld [vmem:[#allocation5 + $0x2f8] sm:$0xff]  ;;  %v1684_v40 = vrot.slane %v1643_v59, %v480_v30  ;;  %v208_v59 = vld [vmem:[#allocation5 + $0x460] sm:$0xff]  ;;  %v82_v30 = vld [vmem:[#allocation5 + $0x70] sm:$0xff] }
  0xa1   :  { %764 = vmatpush2.msra.mxu1 %v437_v41  ;;  %694 = vmatprep.subr.mxu0 %v339_v42  ;;  %v259_v41 = vld [vmem:[#allocation5 + $0x5f8] sm:$0xff] }
  0xa2   :  { %765 = vmatprep.subr.mxu1 %v435_v43  ;;  %695 = vmatpush2.msra.mxu0 %v338_v44  ;;  %v115_v42 = vld [vmem:[#allocation5 + $0x178] sm:$0xff]  ;;  %v160_v44 = vld [vmem:[#allocation5 + $0x2e0] sm:$0xff] }
  0xa3   :  { %766 = vmatpush2.msra.mxu1 %v434_v45  ;;  %696 = vmatprep.subr.mxu0 %v336_v46  ;;  %v211_v43 = vld [vmem:[#allocation5 + $0x478] sm:$0xff]  ;;  %v256_v45 = vld [vmem:[#allocation5 + $0x5e0] sm:$0xff] }
  0xa4   :  { %767 = vmatprep.subr.mxu1 %v432_v48  ;;  %697 = vmatpush2.msra.mxu0 %v335_v49  ;;  %v112_v46 = vld [vmem:[#allocation5 + $0x160] sm:$0xff]  ;;  %v157_v48 = vld [vmem:[#allocation5 + $0x2c8] sm:$0xff] }
  0xa5   :  { %768 = vmatpush2.msra.mxu1 %v431_v50  ;;  %698 = vmatprep.subr.mxu0 %v333_v51  ;;  %v253_v49 = vld [vmem:[#allocation5 + $0x5c8] sm:$0xff] }
  0xa6   :  { %769 = vmatprep.subr.mxu1 %v429_v52  ;;  %699 = vmatpush2.msra.mxu0 %v332_v53  ;;  %v109_v50 = vld [vmem:[#allocation5 + $0x148] sm:$0xff]  ;;  %v154_v52 = vld [vmem:[#allocation5 + $0x2b0] sm:$0xff] }
  0xa7   :  { %770 = vmatpush2.msra.mxu1 %v428_v54  ;;  %700 = vmatprep.subr.mxu0 %v330_v55  ;;  %v205_v51 = vld [vmem:[#allocation5 + $0x448] sm:$0xff]  ;;  %v250_v53 = vld [vmem:[#allocation5 + $0x5b0] sm:$0xff] }
  0xa8   :  { %771 = vmatprep.subr.mxu1 %v426_v57  ;;  %701 = vmatpush2.msra.mxu0 %v329_v58  ;;  %v106_v54 = vld [vmem:[#allocation5 + $0x130] sm:$0xff]  ;;  %v151_v57 = vld [vmem:[#allocation5 + $0x298] sm:$0xff] }
  0xa9   :  { %772 = vmatpush2.msra.mxu1 %v425_v61  ;;  %702 = vmatprep.subr.mxu0 %v327_v62  ;;  %v202_v55 = vld [vmem:[#allocation5 + $0x430] sm:$0xff]  ;;  %v247_v58 = vld [vmem:[#allocation5 + $0x598] sm:$0xff] }
  0xaa   :  { %773 = vmatprep.subr.mxu1 %v423_v63  ;;  %703 = vmatpush2.msra.mxu0 %v326_v0  ;;  %v103_v61 = vld [vmem:[#allocation5 + $0x118] sm:$0xff]  ;;  %v148_v63 = vld [vmem:[#allocation5 + $0x280] sm:$0xff] }
  0xab   :  { %774 = vmatpush2.msra.mxu1 %v422_v1  ;;  %704 = vmatprep.subr.mxu0 %v324_v3  ;;  %v199_v62 = vld [vmem:[#allocation5 + $0x418] sm:$0xff]  ;;  %v244_v0 = vld [vmem:[#allocation5 + $0x580] sm:$0xff] }
  0xac   :  { %775 = vmatprep.subr.mxu1 %v420_v4  ;;  %705 = vmatpush2.msra.mxu0 %v323_v6  ;;  %v100_v1 = vld [vmem:[#allocation5 + $0x100] sm:$0xff]  ;;  %v145_v4 = vld [vmem:[#allocation5 + $0x268] sm:$0xff] }
  0xad   :  { %776 = vmatpush2.msra.mxu1 %v419_v8  ;;  %706 = vmatprep.subr.mxu0 %v321_v10  ;;  %v196_v3 = vld [vmem:[#allocation5 + $0x400] sm:$0xff]  ;;  %v241_v6 = vld [vmem:[#allocation5 + $0x568] sm:$0xff] }
  0xae   :  { %777 = vmatprep.subr.mxu1 %v417_v12  ;;  %707 = vmatpush2.msra.mxu0 %v320_v13  ;;  %v97_v8 = vld [vmem:[#allocation5 + $0xe8] sm:$0xff]  ;;  %v142_v12 = vld [vmem:[#allocation5 + $0x250] sm:$0xff] }
  0xaf   :  { %778 = vmatpush2.msra.mxu1 %v416_v14  ;;  %708 = vmatprep.subr.mxu0 %v318_v15  ;;  %v193_v10 = vld [vmem:[#allocation5 + $0x3e8] sm:$0xff]  ;;  %v238_v13 = vld [vmem:[#allocation5 + $0x550] sm:$0xff] }
  0xb0   :  { %779 = vmatprep.subr.mxu1 %v414_v16  ;;  %709 = vmatpush2.msra.mxu0 %v317_v17  ;;  %v94_v14 = vld [vmem:[#allocation5 + $0xd0] sm:$0xff]  ;;  %v139_v16 = vld [vmem:[#allocation5 + $0x238] sm:$0xff] }
  0xb1   :  { %780 = vmatpush2.msra.mxu1 %v413_v18  ;;  %710 = vmatprep.subr.mxu0 %v315_v19  ;;  %v190_v15 = vld [vmem:[#allocation5 + $0x3d0] sm:$0xff]  ;;  %v235_v17 = vld [vmem:[#allocation5 + $0x538] sm:$0xff] }
  0xb2   :  { %781 = vmatprep.subr.mxu1 %v411_v20  ;;  %711 = vmatpush2.msra.mxu0 %v314_v22  ;;  %v91_v18 = vld [vmem:[#allocation5 + $0xb8] sm:$0xff]  ;;  %v136_v20 = vld [vmem:[#allocation5 + $0x220] sm:$0xff] }
  0xb3   :  { %782 = vmatpush2.msra.mxu1 %v410_v23  ;;  %712 = vmatprep.subr.mxu0 %v312_v25  ;;  %v187_v19 = vld [vmem:[#allocation5 + $0x3b8] sm:$0xff]  ;;  %v88_v22 = vld [vmem:[#allocation5 + $0xa0] sm:$0xff]  ;;  %v229_v25 = vld [vmem:[#allocation5 + $0x508] sm:$0xff] }
  0xb4   :  { %783 = vmatprep.subr.mxu1 %v408_v26  ;;  %713 = vmatpush2.msra.mxu0 %v311_v28  ;;  %v184_v23 = vld [vmem:[#allocation5 + $0x3a0] sm:$0xff]  ;;  %v85_v26 = vld [vmem:[#allocation5 + $0x88] sm:$0xff]  ;;  %v130_v28 = vld [vmem:[#allocation5 + $0x1f0] sm:$0xff] }
  0xb5   :  { %784 = vmatpush2.msra.mxu1 %v407_v29  ;;  %714 = vmatprep.subr.mxu0 %v309_v31  ;;  %v226_v29 = vld [vmem:[#allocation5 + $0x4f0] sm:$0xff] }
  0xb6   :  { %785 = vmatprep.subr.mxu1 %v405_v32  ;;  %715 = vmatpush2.msra.mxu0 %v308_v34  ;;  %v178_v31 = vld [vmem:[#allocation5 + $0x370] sm:$0xff]  ;;  %v127_v32 = vld [vmem:[#allocation5 + $0x1d8] sm:$0xff] }
  0xb7   :  { %716 = vmatprep.mubr.f32.mxu0 %v1675_v33  ;;  %786 = vmatpush2.msra.mxu1 %v404_v36  ;;  %v223_v34 = vld [vmem:[#allocation5 + $0x4d8] sm:$0xff] }
  0xb8   :  { %717 = vmatmul.mubr.f32.vlgmr.msra.gmra.mxu0 %v1678_v35  ;;  %787 = vmatprep.mubr.f32.mxu1 %v1681_v37  ;;  %v79_v36 = vld [vmem:[#allocation5 + $0x58] sm:$0xff] }
  0xb9   :  { %1318 = vmatprep.subr.mxu0 %v163_v39  ;;  %1353 = vmatprep.subr.mxu1 %v259_v41  ;;  %v175_v39 = vld [vmem:[#allocation5 + $0x358] sm:$0xff]  ;;  %v124_v41 = vld [vmem:[#allocation5 + $0x1c0] sm:$0xff] }
  0xba   :  { %788 = vmatmul.mubr.f32.vlgmr.msra.gmra.mxu1 %v1684_v40  ;;  %1319 = vmatpush3.msra.mxu0 %v115_v42  ;;  %v220_v42 = vld [vmem:[#allocation5 + $0x4c0] sm:$0xff] }
  0xbb   :  { %1354 = vmatpush3.msra.mxu1 %v211_v43  ;;  %1320 = vmatprep.subr.mxu0 %v160_v44  ;;  %v76_v43 = vld [vmem:[#allocation5 + $0x40] sm:$0xff] }
  0xbc   :  { %1355 = vmatprep.subr.mxu1 %v256_v45  ;;  %1321 = vmatpush3.msra.mxu0 %v112_v46  ;;  %v172_v44 = vld [vmem:[#allocation5 + $0x340] sm:$0xff]  ;;  %v121_v45 = vld [vmem:[#allocation5 + $0x1a8] sm:$0xff] }
  0xbd   :  { %1356 = vmatpush3.msra.mxu1 %v208_v59  ;;  %1322 = vmatprep.subr.mxu0 %v157_v48  ;;  %v217_v46 = vld [vmem:[#allocation5 + $0x4a8] sm:$0xff] }
  0xbe   :  { %1357 = vmatprep.subr.mxu1 %v253_v49  ;;  %1323 = vmatpush3.msra.mxu0 %v109_v50  ;;  %v73_v59 = vld [vmem:[#allocation5 + $0x28] sm:$0xff]  ;;  %v118_v49 = vld [vmem:[#allocation5 + $0x190] sm:$0xff] }
  0xbf   :  { %1358 = vmatpush3.msra.mxu1 %v205_v51  ;;  %1324 = vmatprep.subr.mxu0 %v154_v52  ;;  %v169_v48 = vld [vmem:[#allocation5 + $0x328] sm:$0xff]  ;;  %v214_v50 = vld [vmem:[#allocation5 + $0x490] sm:$0xff] }
  0xc0   :  { %1359 = vmatprep.subr.mxu1 %v250_v53  ;;  %1325 = vmatpush3.msra.mxu0 %v106_v54  ;;  %v70_v51 = vld [vmem:[#allocation5 + $0x10] sm:$0xff]  ;;  %v355_v53 = vld [vmem:[#allocation5 + $0x8f8] sm:$0xff] }
  0xc1   :  { %1360 = vmatpush3.msra.mxu1 %v202_v55  ;;  %1326 = vmatprep.subr.mxu0 %v151_v57  ;;  %v166_v52 = vld [vmem:[#allocation5 + $0x310] sm:$0xff]  ;;  %v451_v54 = vld [vmem:[#allocation5 + $0xbf8] sm:$0xff] }
  0xc2   :  { %1361 = vmatprep.subr.mxu1 %v247_v58  ;;  %1327 = vmatpush3.msra.mxu0 %v103_v61  ;;  %v307_v55 = vld [vmem:[#allocation5 + $0x778] sm:$0xff]  ;;  %v352_v58 = vld [vmem:[#allocation5 + $0x8e0] sm:$0xff] }
  0xc3   :  { %1362 = vmatpush3.msra.mxu1 %v199_v62  ;;  %1328 = vmatprep.subr.mxu0 %v148_v63  ;;  %v403_v57 = vld [vmem:[#allocation5 + $0xa78] sm:$0xff]  ;;  %v448_v61 = vld [vmem:[#allocation5 + $0xbe0] sm:$0xff] }
  0xc4   :  { %1363 = vmatprep.subr.mxu1 %v244_v0  ;;  %1329 = vmatpush3.msra.mxu0 %v100_v1  ;;  %v304_v62 = vld [vmem:[#allocation5 + $0x760] sm:$0xff]  ;;  %v349_v0 = vld [vmem:[#allocation5 + $0x8c8] sm:$0xff] }
  0xc5   :  { %1364 = vmatpush3.msra.mxu1 %v196_v3  ;;  %1330 = vmatprep.subr.mxu0 %v145_v4  ;;  %v400_v63 = vld [vmem:[#allocation5 + $0xa60] sm:$0xff]  ;;  %v301_v1 = vld [vmem:[#allocation5 + $0x748] sm:$0xff]  ;;  %v346_v3 = vld [vmem:[#allocation5 + $0x8b0] sm:$0xff] }
  0xc6   :  { %1365 = vmatprep.subr.mxu1 %v241_v6  ;;  %1331 = vmatpush3.msra.mxu0 %v97_v8  ;;  %v298_v4 = vld [vmem:[#allocation5 + $0x730] sm:$0xff]  ;;  %v439_v8 = vld [vmem:[#allocation5 + $0xb98] sm:$0xff] }
  0xc7   :  { %1366 = vmatpush3.msra.mxu1 %v193_v10  ;;  %1332 = vmatprep.subr.mxu0 %v142_v12  ;;  %v394_v6 = vld [vmem:[#allocation5 + $0xa30] sm:$0xff]  ;;  %v295_v10 = vld [vmem:[#allocation5 + $0x718] sm:$0xff] }
  0xc8   :  { %1367 = vmatprep.subr.mxu1 %v238_v13  ;;  %1333 = vmatpush3.msra.mxu0 %v94_v14  ;;  %v391_v12 = vld [vmem:[#allocation5 + $0xa18] sm:$0xff]  ;;  %v340_v13 = vld [vmem:[#allocation5 + $0x880] sm:$0xff] }
  0xc9   :  { %1368 = vmatpush3.msra.mxu1 %v190_v15  ;;  %1334 = vmatprep.subr.mxu0 %v139_v16  ;;  %v436_v14 = vld [vmem:[#allocation5 + $0xb80] sm:$0xff] }
  0xca   :  { %1369 = vmatprep.subr.mxu1 %v235_v17  ;;  %1335 = vmatpush3.msra.mxu0 %v91_v18  ;;  %v292_v15 = vld [vmem:[#allocation5 + $0x700] sm:$0xff]  ;;  %v337_v17 = vld [vmem:[#allocation5 + $0x868] sm:$0xff] }
  0xcb   :  { %1370 = vmatpush3.msra.mxu1 %v187_v19  ;;  %1336 = vmatprep.subr.mxu0 %v136_v20  ;;  %v388_v16 = vld [vmem:[#allocation5 + $0xa00] sm:$0xff]  ;;  %v433_v18 = vld [vmem:[#allocation5 + $0xb68] sm:$0xff] }
  0xcc   :  { %1371 = vmatprep.subr.mxu1 %v232_v21  ;;  %1337 = vmatpush3.msra.mxu0 %v88_v22  ;;  %v289_v19 = vld [vmem:[#allocation5 + $0x6e8] sm:$0xff]  ;;  %v334_v21 = vld [vmem:[#allocation5 + $0x850] sm:$0xff] }
  0xcd   :  { %1372 = vmatpush3.msra.mxu1 %v184_v23  ;;  %1338 = vmatprep.subr.mxu0 %v133_v24  ;;  %v385_v20 = vld [vmem:[#allocation5 + $0x9e8] sm:$0xff]  ;;  %v430_v22 = vld [vmem:[#allocation5 + $0xb50] sm:$0xff] }
  0xce   :  { %1373 = vmatprep.subr.mxu1 %v229_v25  ;;  %1339 = vmatpush3.msra.mxu0 %v85_v26  ;;  %v286_v23 = vld [vmem:[#allocation5 + $0x6d0] sm:$0xff]  ;;  %v331_v25 = vld [vmem:[#allocation5 + $0x838] sm:$0xff] }
  0xcf   :  { %1374 = vmatpush3.msra.mxu1 %v181_v27  ;;  %1340 = vmatprep.subr.mxu0 %v130_v28  ;;  %v382_v24 = vld [vmem:[#allocation5 + $0x9d0] sm:$0xff]  ;;  %v427_v26 = vld [vmem:[#allocation5 + $0xb38] sm:$0xff] }
  0xd0   :  { %1375 = vmatprep.subr.mxu1 %v226_v29  ;;  %1341 = vmatpush3.msra.mxu0 %v82_v30  ;;  %v283_v27 = vld [vmem:[#allocation5 + $0x6b8] sm:$0xff]  ;;  %v328_v29 = vld [vmem:[#allocation5 + $0x820] sm:$0xff] }
  0xd1   :  { %1376 = vmatpush3.msra.mxu1 %v178_v31  ;;  %1342 = vmatprep.subr.mxu0 %v127_v32  ;;  %v379_v28 = vld [vmem:[#allocation5 + $0x9b8] sm:$0xff]  ;;  %v424_v30 = vld [vmem:[#allocation5 + $0xb20] sm:$0xff] }
  0xd2   :  { %1377 = vmatprep.subr.mxu1 %v223_v34  ;;  %1343 = vmatpush3.msra.mxu0 %v79_v36  ;;  %v280_v31 = vld [vmem:[#allocation5 + $0x6a0] sm:$0xff]  ;;  %v325_v34 = vld [vmem:[#allocation5 + $0x808] sm:$0xff] }
  0xd3   :  { %1378 = vmatpush3.msra.mxu1 %v175_v39  ;;  %1344 = vmatprep.subr.mxu0 %v124_v41  ;;  %v376_v32 = vld [vmem:[#allocation5 + $0x9a0] sm:$0xff]  ;;  %v421_v36 = vld [vmem:[#allocation5 + $0xb08] sm:$0xff] }
  0xd4   :  { %1379 = vmatprep.subr.mxu1 %v220_v42  ;;  %1345 = vmatpush3.msra.mxu0 %v76_v43  ;;  %v277_v39 = vld [vmem:[#allocation5 + $0x688] sm:$0xff]  ;;  %v322_v42 = vld [vmem:[#allocation5 + $0x7f0] sm:$0xff] }
  0xd5   :  { %1380 = vmatpush3.msra.mxu1 %v172_v44  ;;  %1346 = vmatprep.subr.mxu0 %v121_v45  ;;  %v373_v41 = vld [vmem:[#allocation5 + $0x988] sm:$0xff]  ;;  %v418_v43 = vld [vmem:[#allocation5 + $0xaf0] sm:$0xff] }
  0xd6   :  { %1381 = vmatprep.subr.mxu1 %v217_v46  ;;  %1347 = vmatpush3.msra.mxu0 %v73_v59  ;;  %v274_v44 = vld [vmem:[#allocation5 + $0x670] sm:$0xff]  ;;  %v319_v46 = vld [vmem:[#allocation5 + $0x7d8] sm:$0xff] }
  0xd7   :  { %1382 = vmatpush3.msra.mxu1 %v169_v48  ;;  %1348 = vmatprep.subr.mxu0 %v118_v49  ;;  %v370_v45 = vld [vmem:[#allocation5 + $0x970] sm:$0xff]  ;;  %v415_v59 = vld [vmem:[#allocation5 + $0xad8] sm:$0xff] }
  0xd8   :  { %1383 = vmatprep.subr.mxu1 %v214_v50  ;;  %1349 = vmatpush3.msra.mxu0 %v70_v51  ;;  %v271_v48 = vld [vmem:[#allocation5 + $0x658] sm:$0xff]  ;;  %v316_v50 = vld [vmem:[#allocation5 + $0x7c0] sm:$0xff] }
  0xd9   :  { %858 = vmatprep.mubr.f32.mxu0 %v1651_v5  ;;  %1384 = vmatpush3.msra.mxu1 %v166_v52  ;;  %v445_v5 = vld [vmem:[#allocation5 + $0xbc8] sm:$0xff]  ;;  %v367_v49 = vld [vmem:[#allocation5 + $0x958] sm:$0xff]  ;;  %v412_v51 = vld [vmem:[#allocation5 + $0xac0] sm:$0xff] }
  0xda   :  { %859 = vmatmul.mubr.f32.vlgmr.msra.gmra.mxu0 %v1656_v7  ;;  %928 = vmatprep.mubr.f32.mxu1 %v1659_v9  ;;  %v397_v7 = vld [vmem:[#allocation5 + $0xa48] sm:$0xff]  ;;  %v442_v9 = vld [vmem:[#allocation5 + $0xbb0] sm:$0xff]  ;;  %v268_v52 = vld [vmem:[#allocation5 + $0x640] sm:$0xff] }
  0xdb   :  { %1388 = vmatprep.subr.mxu0 %v355_v53  ;;  %1423 = vmatprep.subr.mxu1 %v451_v54  ;;  %v364_v53 = vld [vmem:[#allocation5 + $0x940] sm:$0xff]  ;;  %v313_v54 = vld [vmem:[#allocation5 + $0x7a8] sm:$0xff] }
  0xdc   :  { %929 = vmatmul.mubr.f32.vlgmr.msra.gmra.mxu1 %v1664_v11  ;;  %1389 = vmatpush3.msra.mxu0 %v307_v55  ;;  %v343_v11 = vld [vmem:[#allocation5 + $0x898] sm:$0xff]  ;;  %v409_v55 = vld [vmem:[#allocation5 + $0xaa8] sm:$0xff] }
  0xdd   :  { %1424 = vmatpush3.msra.mxu1 %v403_v57  ;;  %1390 = vmatprep.subr.mxu0 %v352_v58  ;;  %v265_v57 = vld [vmem:[#allocation5 + $0x628] sm:$0xff] }
  0xde   :  { %1425 = vmatprep.subr.mxu1 %v448_v61  ;;  %1391 = vmatpush3.msra.mxu0 %v304_v62  ;;  %v361_v58 = vld [vmem:[#allocation5 + $0x928] sm:$0xff]  ;;  %v310_v61 = vld [vmem:[#allocation5 + $0x790] sm:$0xff] }
  0xdf   :  { %1426 = vmatpush3.msra.mxu1 %v400_v63  ;;  %1392 = vmatprep.subr.mxu0 %v349_v0  ;;  %v406_v62 = vld [vmem:[#allocation5 + $0xa90] sm:$0xff] }
  0xe0   :  { %1427 = vmatprep.subr.mxu1 %v445_v5  ;;  %1393 = vmatpush3.msra.mxu0 %v301_v1  ;;  %v262_v63 = vld [vmem:[#allocation5 + $0x610] sm:$0xff]  ;;  %v1695_v5 = vld [vmem:[#allocation8] sm:$0xff] }
  0xe1   :  { %1428 = vmatpush3.msra.mxu1 %v397_v7  ;;  %1394 = vmatprep.subr.mxu0 %v346_v3  ;;  %v358_v0 = vld [vmem:[#allocation5 + $0x910] sm:$0xff] }
  0xe2   :  { %1429 = vmatprep.subr.mxu1 %v442_v9  ;;  %1395 = vmatpush3.msra.mxu0 %v298_v4  ;;  %v1700_v1 = vld [vmem:[#allocation8 + $0x10] sm:$0xff]  ;;  %v1706_v7 = vld [vmem:[#allocation8 + $0x8] sm:$0xff] }
  0xe3   :  { %1430 = vmatpush3.msra.mxu1 %v394_v6  ;;  %1396 = vmatprep.subr.mxu0 %v343_v11 }
  0xe4   :  { %1431 = vmatprep.subr.mxu1 %v439_v8  ;;  %1397 = vmatpush3.msra.mxu0 %v295_v10 }
  0xe5   :  { %1432 = vmatpush3.msra.mxu1 %v391_v12  ;;  %1398 = vmatprep.subr.mxu0 %v340_v13 }
  0xe6   :  { %1433 = vmatprep.subr.mxu1 %v436_v14  ;;  %1399 = vmatpush3.msra.mxu0 %v292_v15 }
  0xe7   :  { %1434 = vmatpush3.msra.mxu1 %v388_v16  ;;  %1400 = vmatprep.subr.mxu0 %v337_v17 }
  0xe8   :  { %1435 = vmatprep.subr.mxu1 %v433_v18  ;;  %1401 = vmatpush3.msra.mxu0 %v289_v19 }
  0xe9   :  { %1436 = vmatpush3.msra.mxu1 %v385_v20  ;;  %1402 = vmatprep.subr.mxu0 %v334_v21 }
  0xea   :  { %1437 = vmatprep.subr.mxu1 %v430_v22  ;;  %1403 = vmatpush3.msra.mxu0 %v286_v23 }
  0xeb   :  { %1438 = vmatpush3.msra.mxu1 %v382_v24  ;;  %1404 = vmatprep.subr.mxu0 %v331_v25 }
  0xec   :  { %1439 = vmatprep.subr.mxu1 %v427_v26  ;;  %1405 = vmatpush3.msra.mxu0 %v283_v27 }
  0xed   :  { %1440 = vmatpush3.msra.mxu1 %v379_v28  ;;  %1406 = vmatprep.subr.mxu0 %v328_v29 }
  0xee   :  { %1441 = vmatprep.subr.mxu1 %v424_v30  ;;  %1407 = vmatpush3.msra.mxu0 %v280_v31 }
  0xef   :  { %1442 = vmatpush3.msra.mxu1 %v376_v32  ;;  %1408 = vmatprep.subr.mxu0 %v325_v34 }
  0xf0   :  { %1443 = vmatprep.subr.mxu1 %v421_v36  ;;  %1409 = vmatpush3.msra.mxu0 %v277_v39 }
  0xf1   :  { %1444 = vmatpush3.msra.mxu1 %v373_v41  ;;  %1410 = vmatprep.subr.mxu0 %v322_v42 }
  0xf2   :  { %1445 = vmatprep.subr.mxu1 %v418_v43  ;;  %1411 = vmatpush3.msra.mxu0 %v274_v44 }
  0xf3   :  { %1446 = vmatpush3.msra.mxu1 %v370_v45  ;;  %1412 = vmatprep.subr.mxu0 %v319_v46 }
  0xf4   :  { %1447 = vmatprep.subr.mxu1 %v415_v59  ;;  %1413 = vmatpush3.msra.mxu0 %v271_v48 }
  0xf5   :  { %1448 = vmatpush3.msra.mxu1 %v367_v49  ;;  %1414 = vmatprep.subr.mxu0 %v316_v50 }
  0xf6   :  { %1449 = vmatprep.subr.mxu1 %v412_v51  ;;  %1415 = vmatpush3.msra.mxu0 %v268_v52 }
  0xf7   :  { %1450 = vmatpush3.msra.mxu1 %v364_v53  ;;  %1416 = vmatprep.subr.mxu0 %v313_v54 }
  0xf8   :  { %1451 = vmatprep.subr.mxu1 %v409_v55  ;;  %1417 = vmatpush3.msra.mxu0 %v265_v57 }
  0xf9   :  { %1452 = vmatpush3.msra.mxu1 %v361_v58  ;;  %1418 = vmatprep.subr.mxu0 %v310_v61  ;;  %v1765_v61 = vand.u32 127, %v454_v38 }
  0xfa   :  { %1453 = vmatprep.subr.mxu1 %v406_v62  ;;  %1419 = vmatpush3.msra.mxu0 %v262_v63 }
  0xfb   :  { %998 = vmatprep.mubr.f32.mxu0 %v1675_v33  ;;  %1454 = vmatpush3.msra.mxu1 %v358_v0  ;;  %v452_v33 = vld [vmem:[#allocation7] sm:$0x7]  ;;  %vm1088_vm0 = vcmp.lt.s32.totalorder %v1765_v61, 1  ;;  %vm1116_vm1 = vcmp.lt.s32.totalorder %v1765_v61, 2  ;;  %vm1144_vm2 = vcmp.lt.s32.totalorder %v1765_v61, 127  ;;  %vm1172_vm4 = vcmp.lt.s32.totalorder %v1765_v61, 126 }
  0xfc   :  { %1068 = vmatprep.mubr.f32.mxu1 %v1681_v37  ;;  %999 = vmatmul.mubr.f32.vlgmr.msra.gmra.mxu0 %v1678_v35  ;;  %v498_v37 = vrot.slane %v452_v33, %v456_v60  ;;  %v506_v23 = vrot.slane %v452_v33, %v464_v2  ;;  %v1600_v61 = vmov 1966171168  }
  0xfd   :  { %1069 = vmatmul.mubr.f32.vlgmr.msra.gmra.mxu1 %v1684_v40  ;;  %1080 = vrot.lane.b32.xlu0 %v1695_v5, %s1596_s2  ;;  %v502_v40 = vrot.slane %v452_v33, %v460_v56 }
  0xfe   :  { %1084 = vrot.lane.b32.xlu1 %v1700_v1, %s1596_s2 }
 0x101   :  { %1082 = vrot.lane.b32.xlu0 %v1706_v7, %s1596_s2 }
 0x102   :  { %1112 = vrot.lane.b32.xlu1 %v1706_v7, %s1597_s3 }
 0x105   :  { %1110 = vrot.lane.b32.xlu0 %v1695_v5, %s1597_s3 }
 0x106   :  { %1140 = vrot.lane.b32.xlu1 %v1706_v7, %s1598_s10 }
 0x109   :  { %1114 = vrot.lane.b32.xlu0 %v1700_v1, %s1597_s3 }
 0x10a   :  { %1168 = vrot.lane.b32.xlu1 %v1706_v7, %s1599_s11 }
 0x10d   :  { %1138 = vrot.lane.b32.xlu0 %v1695_v5, %s1598_s10 }
 0x111   :  { %1142 = vrot.lane.b32.xlu0 %v1700_v1, %s1598_s10 }
 0x115   :  { %1166 = vrot.lane.b32.xlu0 %v1695_v5, %s1599_s11 }
 0x119   :  { %1170 = vrot.lane.b32.xlu0 %v1700_v1, %s1599_s11 }
 0x136   :  { %v576_v35 = vpop.f32.mrf.mxu0 }
 0x137   :  { %v577_v4 = vadd.f32 %v576_v35, %v498_v37 }
 0x138   :  { %v647_v3 = vpop.f32.mrf.mxu1  ;;  %v578_v9 = vpop.f32.mrf.mxu0 }
 0x139   :  { %v579_v6 = vadd.f32 %v578_v9, %v502_v40  ;;  %v648_v8 = vadd.f32 %v647_v3, %v577_v4 }
 0x13a   :  { %v649_v11 = vpop.f32.mrf.mxu1 }
 0x13b   :  { %v650_v12 = vadd.f32 %v649_v11, %v579_v6 }
 0x16f   :  { %v1081_v2 = vpop.permute.xlu0 %1080 }
 0x170   :  { %v1085_v45 = vpop.permute.xlu1 %1084 }
 0x171   :  { %v1773_v0 = vsel %vm1088_vm0, %v1085_v45, %v1081_v2 }
 0x172   :  { %vm1092_vm3 = vcmp.eq.s32.totalorder %v1773_v0, %v1695_v5 }
 0x173   :  { %v1083_v43 = vpop.permute.xlu0 %1082 }
 0x174   :  { %v1113_v59 = vpop.permute.xlu1 %1112  ;;  %v1777_v33 = vsel %vm1088_vm0, %v1081_v2, %v1083_v43  ;;  %v1782_v35 = vsel %vm1088_vm0, %v1083_v43, %v1085_v45 }
 0x175   :  { %vm1093_vm5 = vcmp.eq.s32.totalorder %v1777_v33, %v1706_v7  ;;  %vm1094_vm6 = vcmp.eq.s32.totalorder %v1782_v35, %v1700_v1 }
 0x177   :  { %v1111_v44 = vpop.permute.xlu0 %1110 }
 0x178   :  { %v718_v10 = vpop.f32.mrf.mxu0  ;;  %v1141_v49 = vpop.permute.xlu1 %1140  ;;  %v1786_v37 = vsel %vm1116_vm1, %v1111_v44, %v1113_v59 }
 0x179   :  { %v719_v13 = vadd.f32 %v718_v10, %v648_v8  ;;  %vm1121_vm7 = vcmp.eq.s32.totalorder %v1786_v37, %v1706_v7 }
 0x17a   :  { %v789_v14 = vpop.f32.mrf.mxu1  ;;  %v720_v15 = vpop.f32.mrf.mxu0 }
 0x17b   :  { %v790_v16 = vadd.f32 %v789_v14, %v719_v13  ;;  %v721_v17 = vadd.f32 %v720_v15, %v650_v12  ;;  %v1115_v46 = vpop.permute.xlu0 %1114 }
 0x17c   :  { %v791_v18 = vpop.f32.mrf.mxu1  ;;  %v1169_v51 = vpop.permute.xlu1 %1168  ;;  %v1790_v3 = vsel %vm1116_vm1, %v1115_v46, %v1111_v44  ;;  %v1796_v9 = vsel %vm1116_vm1, %v1113_v59, %v1115_v46 }
 0x17d   :  { %v1732_v19 = vmax.f32 %v790_v16, 0.0  ;;  %v792_v60 = vadd.f32 %v791_v18, %v721_v17  ;;  %vm1120_vm8 = vcmp.eq.s32.totalorder %v1790_v3, %v1695_v5  ;;  %vm1122_vm9 = vcmp.eq.s32.totalorder %v1796_v9, %v1700_v1 }
 0x17f   :  { %v1734_v20 = vmax.f32 %v792_v60, 0.0  ;;  %1095 = vrot.lane.b32.xlu1 %v1732_v19, %s1596_s2  ;;  %v1139_v48 = vpop.permute.xlu0 %1138 }
 0x180   :  { %v1803_v6 = vsel %vm1144_vm2, %v1139_v48, %v1141_v49 }
 0x181   :  { %1097 = vrot.lane.b32.xlu0 %v1734_v20, %s1596_s2  ;;  %vm1148_vm10 = vcmp.eq.s32.totalorder %v1803_v6, %v1695_v5 }
 0x183   :  { %1123 = vrot.lane.b32.xlu1 %v1732_v19, %s1597_s3  ;;  %v1143_v50 = vpop.permute.xlu0 %1142 }
 0x184   :  { %v1822_v12 = vsel %vm1144_vm2, %v1141_v49, %v1143_v50  ;;  %v1830_v14 = vsel %vm1144_vm2, %v1143_v50, %v1139_v48 }
 0x185   :  { %1125 = vrot.lane.b32.xlu0 %v1734_v20, %s1597_s3  ;;  %vm1149_vm11 = vcmp.eq.s32.totalorder %v1822_v12, %v1706_v7  ;;  %vm1150_vm13 = vcmp.eq.s32.totalorder %v1830_v14, %v1700_v1 }
 0x187   :  { %1151 = vrot.lane.b32.xlu1 %v1732_v19, %s1598_s10  ;;  %v1167_v52 = vpop.permute.xlu0 %1166 }
 0x188   :  { %v1826_v13 = vsel %vm1172_vm4, %v1167_v52, %v1169_v51 }
 0x189   :  { %1153 = vrot.lane.b32.xlu0 %v1734_v20, %s1598_s10  ;;  %vm1176_vm12 = vcmp.eq.s32.totalorder %v1826_v13, %v1695_v5 }
 0x18b   :  { %1179 = vrot.lane.b32.xlu1 %v1732_v19, %s1599_s11  ;;  %v1171_v54 = vpop.permute.xlu0 %1170 }
 0x18d   :  { %1181 = vrot.lane.b32.xlu0 %v1734_v20, %s1599_s11 }
 0x19a   :  { %v1350_v56 = vpop.f32.mrf.mxu0 }
 0x19c   :  { %v1385_v21 = vpop.f32.mrf.mxu1  ;;  %v1351_v22 = vpop.f32.mrf.mxu0 }
 0x19d   :  { %v1352_v24 = vadd.f32 %v1351_v22, %v1350_v56 }
 0x19e   :  { %v1386_v25 = vpop.f32.mrf.mxu1 }
 0x19f   :  { %v861_v26 = vadd.f32 %v1352_v24, %v506_v23  ;;  %v1387_v27 = vadd.f32 %v1386_v25, %v1385_v21  ;;  %v1857_v25 = vsel %vm1172_vm4, %v1169_v51, %v1171_v54 }
 0x1a0   :  { %vm1177_vm14 = vcmp.eq.s32.totalorder %v1857_v25, %v1706_v7 }
 0x1a1   :  { %v931_v32 = vadd.f32 %v1387_v27, %v861_v26  ;;  %v1861_v26 = vsel %vm1172_vm4, %v1171_v54, %v1167_v52 }
 0x1a2   :  { %vm1178_vm15 = vcmp.eq.s32.totalorder %v1861_v26, %v1700_v1 }
 0x1bc   :  { %v1420_v28 = vpop.f32.mrf.mxu0 }
 0x1bd   :  { %v1455_v29 = vpop.f32.mrf.mxu1 }
 0x1be   :  { %v1421_v30 = vpop.f32.mrf.mxu0 }
 0x1bf   :  { %v1456_v31 = vpop.f32.mrf.mxu1  ;;  %v1422_v34 = vadd.f32 %v1421_v30, %v1420_v28 }
 0x1c0   :  { %v1457_v39 = vadd.f32 %v1456_v31, %v1455_v29 }
 0x1c1   :  { %v1001_v36 = vadd.f32 %v1422_v34, %v931_v32 }
 0x1c3   :  { %v1071_v41 = vadd.f32 %v1457_v39, %v1001_v36 }
 0x1c5   :  { %v1754_v42 = vmax.f32 %v1071_v41, 0.0 }
 0x1c7   :  { %1099 = vrot.lane.b32.xlu1 %v1754_v42, %s1596_s2 }
 0x1cb   :  { %1127 = vrot.lane.b32.xlu1 %v1754_v42, %s1597_s3 }
 0x1cf   :  { %1155 = vrot.lane.b32.xlu1 %v1754_v42, %s1598_s10 }
 0x1d3   :  { %1183 = vrot.lane.b32.xlu1 %v1754_v42, %s1599_s11 }
 0x1f1   :  { %v1096_v53 = vpop.permute.xlu1 %1095 }
 0x1f3   :  { %v1098_v57 = vpop.permute.xlu0 %1097 }
 0x1f4   :  { %v1102_v11 = vsel %vm1088_vm0, %v1096_v53, %v1098_v57 }
 0x1f5   :  { %v1124_v55 = vpop.permute.xlu1 %1123  ;;  %v1105_v15 = vsel %vm1093_vm5, %v1102_v11, -inf }
 0x1f6   :  { %v1108_v29 = vmax.f32 %v1734_v20, %v1105_v15 }
 0x1f7   :  { %v1126_v62 = vpop.permute.xlu0 %1125 }
 0x1f8   :  { %v1130_v18 = vsel %vm1116_vm1, %v1124_v55, %v1126_v62 }
 0x1f9   :  { %v1152_v58 = vpop.permute.xlu1 %1151  ;;  %v1133_v30 = vsel %vm1121_vm7, %v1130_v18, -inf }
 0x1fa   :  { %v1136_v45 = vmax.f32 %v1108_v29, %v1133_v30 }
 0x1fb   :  { %v1154_v40 = vpop.permute.xlu0 %1153 }
 0x1fc   :  { %v1158_v60 = vsel %vm1144_vm2, %v1152_v58, %v1154_v40 }
 0x1fd   :  { %v1769_v63 = vpop.permute.xlu1 %1179  ;;  %v1160_v31 = vsel %vm1148_vm10, %v1158_v60, -inf }
 0x1ff   :  { %v1182_v56 = vpop.permute.xlu0 %1181 }
 0x200   :  { %v1186_v32 = vsel %vm1172_vm4, %v1769_v63, %v1182_v56 }
 0x201   :  { %v1188_v46 = vsel %vm1176_vm12, %v1186_v32, -inf }
 0x239   :  { %v1100_v4 = vpop.permute.xlu1 %1099 }
 0x23a   :  { %v1103_v8 = vsel %vm1088_vm0, %v1100_v4, %v1096_v53  ;;  %v1101_v16 = vsel %vm1088_vm0, %v1098_v57, %v1100_v4 }
 0x23b   :  { %v1104_v10 = vsel %vm1092_vm3, %v1103_v8, -inf  ;;  %v1106_v27 = vsel %vm1094_vm6, %v1101_v16, -inf }
 0x23c   :  { %v1107_v21 = vmax.f32 %v1732_v19, %v1104_v10  ;;  %v1109_v43 = vmax.f32 %v1754_v42, %v1106_v27 }
 0x23d   :  { %v1128_v17 = vpop.permute.xlu1 %1127 }
 0x23e   :  { %v1131_v22 = vsel %vm1116_vm1, %v1128_v17, %v1124_v55  ;;  %v1129_v23 = vsel %vm1116_vm1, %v1126_v62, %v1128_v17 }
 0x23f   :  { %v1132_v24 = vsel %vm1120_vm8, %v1131_v22, -inf  ;;  %v1134_v36 = vsel %vm1122_vm9, %v1129_v23, -inf }
 0x240   :  { %v1135_v28 = vmax.f32 %v1107_v21, %v1132_v24  ;;  %v1137_v59 = vmax.f32 %v1109_v43, %v1134_v36 }
 0x241   :  { %v1156_v34 = vpop.permute.xlu1 %1155 }
 0x242   :  { %v1163_v39 = vmax.f32 %v1135_v28, %v1160_v31  ;;  %v1157_v41 = vsel %vm1144_vm2, %v1154_v40, %v1156_v34  ;;  %v1159_v2 = vsel %vm1144_vm2, %v1156_v34, %v1152_v58 }
 0x243   :  { %v1161_v44 = vsel %vm1149_vm11, %v1157_v41, -inf  ;;  %v1162_v48 = vsel %vm1150_vm13, %v1159_v2, -inf }
 0x244   :  { %v1191_v50 = vmax.f32 %v1163_v39, %v1188_v46  ;;  %v1164_v51 = vmax.f32 %v1136_v45, %v1161_v44  ;;  %v1165_v57 = vmax.f32 %v1137_v59, %v1162_v48 }
 0x245   :  { %v1184_v49 = vpop.permute.xlu1 %1183 }
 0x246   :  { %v1185_v52 = vsel %vm1172_vm4, %v1182_v56, %v1184_v49  ;;  %v1187_v53 = vsel %vm1172_vm4, %v1184_v49, %v1769_v63  ;;  %v1194_v62 = vsub.f32 %v1732_v19, %v1191_v50 }
 0x247   :  { %v1189_v54 = vsel %vm1177_vm14, %v1185_v52, -inf  ;;  %v1190_v55 = vsel %vm1178_vm15, %v1187_v53, -inf }
 0x248   :  { %v1192_v58 = vmax.f32 %v1164_v51, %v1189_v54  ;;  %v1193_v40 = vmax.f32 %v1165_v57, %v1190_v55  ;;  %v1197_v8 = vmul.f32 1.442695, %v1194_v62 }
 0x24a   :  { %v1195_v4 = vsub.f32 %v1734_v20, %v1192_v58  ;;  %v1196_v10 = vsub.f32 %v1754_v42, %v1193_v40 }
 0x24c   :  { %v1199_v11 = vmul.f32 1.442695, %v1195_v4  ;;  %v1201_v63 = vmul.f32 1.442695, %v1196_v10 }
 0x24e   :  { %1470 = vpow2.f32 %v1199_v11  ;;  %v1274_v11 = vunpack.c.l.s4 %v1600_v61 }
 0x24f   :  { %1472 = vpow2.f32 %v1197_v8 }
 0x250   :  { %1474 = vpow2.f32 %v1201_v63  ;;  %v1275_v8 = vunpack.c.0.s8 %v1274_v11 }
 0x252   :  { %v1278_v25 = vsub.s32 %v1275_v8, %v1640_v47 }
 0x25b   :  { %v1913_v15 = vpop.eup %1470 }
 0x25c   :  { %1220 = vrot.lane.b32.xlu0 %v1913_v15, %s1597_s3  ;;  %1205 = vrot.lane.b32.xlu1 %v1913_v15, %s1596_s2  ;;  %v1919_v19 = vpop.eup %1472 }
 0x25d   :  { %v1925_v20 = vpop.eup %1474 }
 0x260   :  { %1203 = vrot.lane.b32.xlu0 %v1919_v19, %s1596_s2  ;;  %1235 = vrot.lane.b32.xlu1 %v1913_v15, %s1598_s10 }
 0x264   :  { %1207 = vrot.lane.b32.xlu0 %v1925_v20, %s1596_s2  ;;  %1218 = vrot.lane.b32.xlu1 %v1919_v19, %s1597_s3 }
 0x268   :  { %1233 = vrot.lane.b32.xlu0 %v1919_v19, %s1598_s10  ;;  %1222 = vrot.lane.b32.xlu1 %v1925_v20, %s1597_s3 }
 0x26c   :  { %1237 = vrot.lane.b32.xlu0 %v1925_v20, %s1598_s10  ;;  %1248 = vrot.lane.b32.xlu1 %v1919_v19, %s1599_s11 }
 0x270   :  { %1250 = vrot.lane.b32.xlu0 %v1913_v15, %s1599_s11  ;;  %1252 = vrot.lane.b32.xlu1 %v1925_v20, %s1599_s11 }
 0x2ce   :  { %v1221_v42 = vpop.permute.xlu0 %1220  ;;  %v1206_v16 = vpop.permute.xlu1 %1205 }
 0x2d2   :  { %v1204_v17 = vpop.permute.xlu0 %1203  ;;  %v1236_v18 = vpop.permute.xlu1 %1235 }
 0x2d3   :  { %v1210_v22 = vsel %vm1088_vm0, %v1204_v17, %v1206_v16 }
 0x2d4   :  { %v1213_v30 = vsel %vm1093_vm5, %v1210_v22, 0.0 }
 0x2d5   :  { %v1216_v39 = vadd.f32 %v1913_v15, %v1213_v30 }
 0x2d6   :  { %v1208_v60 = vpop.permute.xlu0 %1207  ;;  %v1219_v56 = vpop.permute.xlu1 %1218 }
 0x2d7   :  { %v1211_v21 = vsel %vm1088_vm0, %v1208_v60, %v1204_v17  ;;  %v1209_v23 = vsel %vm1088_vm0, %v1206_v16, %v1208_v60  ;;  %v1225_v27 = vsel %vm1116_vm1, %v1219_v56, %v1221_v42  ;;  %vm1298_vm0 = vcmp.lt.s32.totalorder %v454_v38, 384 }
 0x2d8   :  { %v1212_v24 = vsel %vm1092_vm3, %v1211_v21, 0.0  ;;  %v1214_v0 = vsel %vm1094_vm6, %v1209_v23, 0.0  ;;  %v1228_v33 = vsel %vm1121_vm7, %v1225_v27, 0.0 }
 0x2d9   :  { %v1215_v34 = vadd.f32 %v1919_v19, %v1212_v24  ;;  %v1217_v45 = vadd.f32 %v1925_v20, %v1214_v0  ;;  %v1231_v46 = vadd.f32 %v1228_v33, %v1216_v39 }
 0x2da   :  { %v1234_v28 = vpop.permute.xlu0 %1233  ;;  %v1223_v29 = vpop.permute.xlu1 %1222 }
 0x2db   :  { %v1224_v31 = vsel %vm1116_vm1, %v1221_v42, %v1223_v29  ;;  %v1226_v32 = vsel %vm1116_vm1, %v1223_v29, %v1219_v56  ;;  %v1240_v41 = vsel %vm1144_vm2, %v1234_v28, %v1236_v18 }
 0x2dc   :  { %v1227_v36 = vsel %vm1120_vm8, %v1226_v32, 0.0  ;;  %v1229_v35 = vsel %vm1122_vm9, %v1224_v31, 0.0  ;;  %v1242_v48 = vsel %vm1148_vm10, %v1240_v41, 0.0 }
 0x2dd   :  { %v1230_v2 = vadd.f32 %v1227_v36, %v1215_v34  ;;  %v1232_v49 = vadd.f32 %v1229_v35, %v1217_v45 }
 0x2de   :  { %v1238_v43 = vpop.permute.xlu0 %1237  ;;  %v1249_v44 = vpop.permute.xlu1 %1248 }
 0x2df   :  { %v1239_v3 = vsel %vm1144_vm2, %v1236_v18, %v1238_v43  ;;  %v1241_v37 = vsel %vm1144_vm2, %v1238_v43, %v1234_v28  ;;  %v1245_v52 = vadd.f32 %v1242_v48, %v1230_v2 }
 0x2e0   :  { %v1243_v59 = vsel %vm1149_vm11, %v1239_v3, 0.0  ;;  %v1244_v9 = vsel %vm1150_vm13, %v1241_v37, 0.0 }
 0x2e1   :  { %v1246_v50 = vadd.f32 %v1243_v59, %v1231_v46  ;;  %v1247_v54 = vadd.f32 %v1244_v9, %v1232_v49 }
 0x2e2   :  { %v1251_v51 = vpop.permute.xlu0 %1250  ;;  %v1253_v53 = vpop.permute.xlu1 %1252 }
 0x2e3   :  { %v1255_v55 = vsel %vm1172_vm4, %v1249_v44, %v1251_v51  ;;  %v1254_v12 = vsel %vm1172_vm4, %v1251_v51, %v1253_v53  ;;  %v1256_v14 = vsel %vm1172_vm4, %v1253_v53, %v1249_v44 }
 0x2e4   :  { %v1257_v6 = vsel %vm1176_vm12, %v1255_v55, 0.0  ;;  %v1258_v57 = vsel %vm1177_vm14, %v1254_v12, 0.0  ;;  %v1259_v58 = vsel %vm1178_vm15, %v1256_v14, 0.0 }
 0x2e5   :  { %v1260_v62 = vadd.f32 %v1257_v6, %v1245_v52  ;;  %v1261_v40 = vadd.f32 %v1258_v57, %v1246_v50  ;;  %v1262_v4 = vadd.f32 %v1259_v58, %v1247_v54 }
 0x2e7   :  { %1476 = vrcp.f32 %v1260_v62 }
 0x2e8   :  { %1478 = vrcp.f32 %v1261_v40 }
 0x2e9   :  { %1480 = vrcp.f32 %v1262_v4 }
 0x2f4   :  { %v1477_v10 = vpop.eup %1476 }
 0x2f5   :  { %v1479_v5 = vpop.eup %1478  ;;  %v1264_v13 = vmul.f32 %v1477_v10, %v1919_v19 }
 0x2f6   :  { %v1481_v63 = vpop.eup %1480  ;;  %v1266_v7 = vmul.f32 %v1479_v5, %v1913_v15 }
 0x2f7   :  { %v1268_v1 = vmul.f32 %v1481_v63, %v1925_v20 }
 0x2f8   :  { %v1272_v26 = vcombine.low %v1264_v13, %v1266_v7 }
 0x2f9   :  { %v1286_v16 = vrot.slane %v1268_v1, %v1278_v25 }
 0x2fa   :  { %v1279_v42 = vrot.slane %v1272_v26, %v1278_v25 }
 0x2fc   :  { %v1287_v17 = vcombine.low %v1279_v42, %v1286_v16 }
 0x2fe   :  { %v1294_v18 = vrot.slane %v1287_v17, %v1278_v25 }
 0x300   :  { %1300 = vst.msk [vmem:[#allocation10] sm:$0x7] %vm1298_vm0, %v1294_v18 }
 0x301   :  { %1573 = shalt.err (!%p1570_p10)
}
 0x302   :  { %1310 = dma.vmem_to_hbm [thread:$0]  %s1308_s13, 48, %s2018_s4, [#allocation4]  }
 0x303   :  { %1588 = dma.done.wait [#allocation4], 48  }
 0x304   :  { %1589 = vsyncadd [#allocation4], 4294967248 }
 0x305   :  { %1314 = vsyncpa [#allocation3], 1 }
 0x306   :  { %1315 = vsyncpa [#allocation6], 1 }
 0x307   :  { %1316 = vsyncpa [#allocation9], 1 }
 0x308   :  { %1317 = vsyncpa [#allocation4], 1 }

</bundles_post_ra>
